<compile_context>
chip_gen: v7x
topology: tpu7x:2x2x1
jax: 0.10.0
libtpu: 0.0.40
codegen_flags: <defaults>
</compile_context>

<pallas_src>
import jax
import jax.numpy as jnp
import numpy as np
from jax.experimental import pallas as pl
from jax.experimental.pallas import tpu as pltpu


def _round_up(v, m):
    return (v + m - 1) // m * m


def _pick_tm(n, candidates=(256, 128)):
    """Pick a row tile (multiple of 128) that minimizes padded Np; prefer the
    larger tile on ties (better MXU occupancy on v6e/v7x's 256-wide MXU)."""
    best_tm, best_key = candidates[-1], None
    for tm in candidates:
        np_ = _round_up(max(n, 1), tm)
        key = (np_, -tm)
        if best_key is None or key < best_key:
            best_key, best_tm = key, tm
    return best_tm


def graph_encoder_kernel(eps_ref, adj_ref, xhi_ref, xlo_ref, xself_ref,
                         w1_ref, b1_ref, w2_ref, b2_ref, pool_ref,
                         o_ref, agg_ref):
    # grid = (partials c [parallel], row tiles i [arbitrary], k tiles [arbitrary])
    i = pl.program_id(1)
    k = pl.program_id(2)

    @pl.when(jnp.logical_and(i == 0, k == 0))
    def _init_out():
        o_ref[...] = jnp.zeros_like(o_ref)

    @pl.when(k == 0)
    def _init_agg():
        agg_ref[...] = jnp.zeros_like(agg_ref)

    # --- GIN aggregation, native bf16 MXU path -------------------------------
    # adj entries are exact small integers in bf16; x is split into hi/lo bf16
    # planes in the wrapper so xhi + xlo recovers ~f32 precision.
    adj = adj_ref[...]                                                   # (tm, tk) bf16
    agg_ref[...] += (
        jnp.dot(adj, xhi_ref[...], preferred_element_type=jnp.float32)
        + jnp.dot(adj, xlo_ref[...], preferred_element_type=jnp.float32))

    @pl.when(k == pl.num_programs(2) - 1)
    def _finish():
        # (1+eps)*x_i + sum_j A[i,j] x_j
        h_pre = (1.0 + eps_ref[0]) * xself_ref[...] + agg_ref[...]       # (tm, Fp)

        # MLP: Linear -> ReLU -> Linear (FWT affine folded into w2/b2)
        h1 = jnp.dot(h_pre, w1_ref[...],
                     preferred_element_type=jnp.float32) + b1_ref[...]
        h1 = jnp.maximum(h1, 0.0)
        h = jnp.dot(h1, w2_ref[...],
                    preferred_element_type=jnp.float32) + b2_ref[...]

        # SiLU
        h = h * jax.nn.sigmoid(h)

        # accumulate pooled mean: pool tile (Gp, tm) @ h (tm, Dp)
        pooled = jnp.dot(pool_ref[...], h, preferred_element_type=jnp.float32)
        o_ref[...] += pooled[None, :, :]


def graph_encoder_forward(x, edge_index, batch, params, fwt_noise, num_graphs,
                          *, tm=None, tk_max=512, num_partials=1):
    """x: (N, F) f32, edge_index: (2, E) i32, batch: (N,) i32.

    num_partials: set to the TensorCore count (1 on v5e/v6e, 2 on v7x) to shard
    the leading 'parallel' grid axis across cores.
    """
    N, F = x.shape
    d_h = params["w1"].shape[1]

    # ---- lane/sublane padding & tiling ----
    Fp = _round_up(max(F, 1), 128)
    Dp = _round_up(max(d_h, 1), 128)
    Gp = _round_up(max(num_graphs, 1), 8)

    if tm is None:
        tm = _pick_tm(N)
    tiles = max(pl.cdiv(N, tm), 1)
    tiles = _round_up(tiles, num_partials)       # keep an equal tile count per partial
    Np = tiles * tm
    T = tiles // num_partials                    # row tiles per parallel partial

    # contraction tile tk: multiple of 128 that divides Np, capped by tk_max
    nb = Np // 128
    kb_max = max(tk_max // 128, 1)
    kb = 1
    for d in range(min(nb, kb_max), 0, -1):
        if nb % d == 0:
            kb = d
            break
    tk = kb * 128
    KT = Np // tk

    # ---- glue: padded features, dense adjacency & pooling matrix (plain JAX) ----
    # TODO(synk): for very sparse / very large graphs, replace the dense O(N^2)
    # adjacency with an edge-list gather / segment-sum driven by scalar prefetch.
    xf = jnp.zeros((Np, Fp), jnp.float32).at[:N, :F].set(x.astype(jnp.float32))
    xhi = xf.astype(jnp.bfloat16)
    xlo = (xf - xhi.astype(jnp.float32)).astype(jnp.bfloat16)   # hi/lo split ~ f32

    src, dst = edge_index[0], edge_index[1]
    # bf16 adjacency is exact only for integer multiplicities <= 256.
    # TODO(synk): add an f32 fallback for graphs with >256 parallel edges per pair.
    adj = (jnp.zeros((Np, Np), jnp.float32).at[dst, src].add(1.0)
           .astype(jnp.bfloat16))

    batch_p = jnp.full((Np,), -1, jnp.int32).at[:N].set(batch.astype(jnp.int32))
    onehot = (batch_p[None, :] ==
              jnp.arange(Gp, dtype=jnp.int32)[:, None]).astype(jnp.float32)
    counts = jnp.maximum(onehot.sum(axis=1, keepdims=True), 1.0)
    pool = onehot / counts                                          # (Gp, Np)

    # ---- glue: padded parameters, FWT rsample folded into the second linear ----
    # TODO(synk): Normal.rsample RNG has no in-kernel equivalent here; the noise
    # is drawn outside and the reparameterization is applied below.
    gamma_sample = 1.0 + jax.nn.softplus(params["gamma"]) * fwt_noise[0]
    beta_sample = jax.nn.softplus(params["beta"]) * fwt_noise[1]
    w2_fused = params["w2"] * gamma_sample[None, :]
    b2_fused = gamma_sample * params["b2"] + beta_sample

    w1 = jnp.zeros((Fp, Dp), jnp.float32).at[:F, :d_h].set(params["w1"])
    b1 = jnp.zeros((1, Dp), jnp.float32).at[0, :d_h].set(params["b1"])
    w2 = jnp.zeros((Dp, Dp), jnp.float32).at[:d_h, :d_h].set(w2_fused)
    b2 = jnp.zeros((1, Dp), jnp.float32).at[0, :d_h].set(b2_fused)
    eps = jnp.asarray(params["eps"], jnp.float32).reshape((1,))

    flops = int(4 * Np * Np * Fp                      # two bf16 adj matmuls
                + 2 * Np * Fp * Dp + 2 * Np * Dp * Dp
                + 2 * Gp * Np * Dp + 10 * Np * Dp)
    transcendentals = int(Np * Dp)
    bytes_accessed = int(Np * Np * 2                  # adj (bf16)
                         + tiles * 2 * Np * Fp * 2    # xhi + xlo streamed per row tile
                         + Np * Fp * 4                # xself
                         + (Fp * Dp + Dp * Dp + 2 * Dp) * 4
                         + Gp * Np * 4
                         + num_partials * Gp * Dp * 4)

    partial = pl.pallas_call(
        graph_encoder_kernel,
        out_shape=jax.ShapeDtypeStruct((num_partials, Gp, Dp), jnp.float32),
        grid=(num_partials, T, KT),
        in_specs=[
            pl.BlockSpec(memory_space=pltpu.MemorySpace.SMEM),            # eps (scalar)
            pl.BlockSpec((tm, tk), lambda c, i, k: (c * T + i, k)),       # adj (bf16)
            pl.BlockSpec((tk, Fp), lambda c, i, k: (k, 0)),               # x hi plane
            pl.BlockSpec((tk, Fp), lambda c, i, k: (k, 0)),               # x lo plane
            pl.BlockSpec((tm, Fp), lambda c, i, k: (c * T + i, 0)),       # x self (f32)
            pl.BlockSpec((Fp, Dp), lambda c, i, k: (0, 0)),               # w1
            pl.BlockSpec((1, Dp), lambda c, i, k: (0, 0)),                # b1
            pl.BlockSpec((Dp, Dp), lambda c, i, k: (0, 0)),               # w2 (FWT folded)
            pl.BlockSpec((1, Dp), lambda c, i, k: (0, 0)),                # b2 (FWT folded)
            pl.BlockSpec((Gp, tm), lambda c, i, k: (0, c * T + i)),       # pool col tile
        ],
        out_specs=pl.BlockSpec((1, Gp, Dp), lambda c, i, k: (c, 0, 0)),
        scratch_shapes=[pltpu.VMEM((tm, Fp), jnp.float32)],               # agg accumulator
        compiler_params=pltpu.CompilerParams(
            dimension_semantics=("parallel", "arbitrary", "arbitrary"),
            vmem_limit_bytes=32 * 1024 * 1024,
        ),
        cost_estimate=pl.CostEstimate(flops=flops,
                                      transcendentals=transcendentals,
                                      bytes_accessed=bytes_accessed),
    )(eps, adj, xhi, xlo, xf, w1, b1, w2, b2, pool)

    # reduce the per-core partials and strip padding
    return partial.sum(axis=0)[:num_graphs, :d_h]


def reference_forward(x, edge_index, batch, params, fwt_noise, num_graphs):
    src, dst = edge_index[0], edge_index[1]
    agg = jnp.zeros_like(x).at[dst].add(x[src])
    h_pre = (1.0 + params["eps"]) * x + agg
    h1 = jnp.maximum(h_pre @ params["w1"] + params["b1"], 0.0)
    h = h1 @ params["w2"] + params["b2"]
    gamma_sample = 1.0 + jax.nn.softplus(params["gamma"]) * fwt_noise[0]
    beta_sample = jax.nn.softplus(params["beta"]) * fwt_noise[1]
    h = gamma_sample * h + beta_sample
    h = h * jax.nn.sigmoid(h)
    onehot = (batch[None, :] == jnp.arange(num_graphs, dtype=batch.dtype)[:, None]
              ).astype(jnp.float32)
    counts = jnp.maximum(onehot.sum(axis=1, keepdims=True), 1.0)
    return (onehot / counts) @ h


if __name__ == "__main__":
    key = jax.random.PRNGKey(0)
    # nodes, input_dim, d_h, edges, graphs.  With tm=128 this gives 3 row tiles
    # and (via tk_max=128 below) 3 contraction tiles -> exercises the full
    # init / accumulate / finalize grid structure.
    N, F, D_H, E, G = 300, 8, 32, 900, 3

    k_x, k_e, k_w1, k_b1, k_w2, k_b2, k_ng, k_nb = jax.random.split(key, 8)

    x = jax.random.normal(k_x, (N, F), jnp.float32)
    edge_index = jax.random.randint(k_e, (2, E), 0, N, jnp.int32)
    batch = jnp.repeat(jnp.arange(G, dtype=jnp.int32), N // G)

    params = {
        "w1": jax.random.normal(k_w1, (F, D_H), jnp.float32) * 0.1,
        "b1": jax.random.normal(k_b1, (D_H,), jnp.float32) * 0.1,
        "w2": jax.random.normal(k_w2, (D_H, D_H), jnp.float32) * 0.1,
        "b2": jax.random.normal(k_b2, (D_H,), jnp.float32) * 0.1,
        "gamma": jnp.zeros((D_H,), jnp.float32),   # FWT gamma param init = 0
        "beta": jnp.zeros((D_H,), jnp.float32),    # FWT beta  param init = 0
        "eps": jnp.float32(0.0),                   # GINConv train_eps init = 0
    }
    # reparameterization noise for the FWT rsample (one draw per feature)
    fwt_noise = jnp.stack([jax.random.normal(k_ng, (D_H,), jnp.float32),
                           jax.random.normal(k_nb, (D_H,), jnp.float32)])

    out = graph_encoder_forward(x, edge_index, batch, params, fwt_noise, G,
                                tk_max=128)   # num_partials=1 (single TC); use 2 on v7x
    out = jax.block_until_ready(out)

    ref = reference_forward(x, edge_index, batch, params, fwt_noise, G)
    np.testing.assert_allclose(np.asarray(out), np.asarray(ref), rtol=1e-4, atol=1e-5)

    print("KERNEL_OK")
</pallas_src>

<mosaic_0001>
module attributes {stable_mosaic.version = 11 : i64} {
  func.func @graph_encoder_kernel(%arg0: i32, %arg1: i32, %arg2: i32, %arg3: memref<1xf32, #tpu.memory_space<smem>>, %arg4: memref<128x128xbf16, #tpu.memory_space<vmem>>, %arg5: memref<128x128xbf16, #tpu.memory_space<vmem>>, %arg6: memref<128x128xbf16, #tpu.memory_space<vmem>>, %arg7: memref<128x128xf32, #tpu.memory_space<vmem>>, %arg8: memref<128x128xf32, #tpu.memory_space<vmem>>, %arg9: memref<1x128xf32, #tpu.memory_space<vmem>>, %arg10: memref<128x128xf32, #tpu.memory_space<vmem>>, %arg11: memref<1x128xf32, #tpu.memory_space<vmem>>, %arg12: memref<8x128xf32, #tpu.memory_space<vmem>>, %arg13: memref<1x8x128xf32, #tpu.memory_space<vmem>>, %arg14: memref<128x128xf32, #tpu.memory_space<vmem>>) attributes {dimension_semantics = [#tpu.dimension_semantics<parallel>, #tpu.dimension_semantics<arbitrary>, #tpu.dimension_semantics<arbitrary>], iteration_bounds = array<i64: 1, 3, 3>, scalar_prefetch = 0 : i64, scratch_operands = 1 : i64, tpu.core_type = #tpu.core_type<tc>, window_params = [{transform_indices = @transform_0, window_bounds = array<i64: 1>}, {transform_indices = @transform_1, window_bounds = array<i64: 128, 128>}, {transform_indices = @transform_2, window_bounds = array<i64: 128, 128>}, {transform_indices = @transform_3, window_bounds = array<i64: 128, 128>}, {transform_indices = @transform_4, window_bounds = array<i64: 128, 128>}, {pipeline_mode = #tpu.pipeline_mode<synchronous>, transform_indices = @transform_5, window_bounds = array<i64: 128, 128>}, {pipeline_mode = #tpu.pipeline_mode<synchronous>, transform_indices = @transform_6, window_bounds = array<i64: 1, 128>}, {pipeline_mode = #tpu.pipeline_mode<synchronous>, transform_indices = @transform_7, window_bounds = array<i64: 128, 128>}, {pipeline_mode = #tpu.pipeline_mode<synchronous>, transform_indices = @transform_8, window_bounds = array<i64: 1, 128>}, {transform_indices = @transform_9, window_bounds = array<i64: 8, 128>}, {transform_indices = @transform_10, window_bounds = array<i64: 1, 8, 128>}]} {
    %c0_i32 = arith.constant 0 : i32
    %0 = arith.cmpi eq, %arg1, %c0_i32 : i32
    %c0_i32_0 = arith.constant 0 : i32
    %1 = arith.cmpi eq, %arg2, %c0_i32_0 : i32
    %2 = arith.andi %0, %1 : i1
    %3 = arith.extui %2 : i1 to i32
    %c0_i32_1 = arith.constant 0 : i32
    %4 = arith.cmpi ne, %3, %c0_i32_1 : i32
    scf.if %4 {
      %cst_15 = arith.constant 0.000000e+00 : f32
      %20 = vector.broadcast %cst_15 : f32 to vector<1x8x128xf32>
      %c0_16 = arith.constant 0 : index
      %c0_17 = arith.constant 0 : index
      %c0_18 = arith.constant 0 : index
      %21 = vector.load %arg13[%c0_16, %c0_17, %c0_18] : memref<1x8x128xf32, #tpu.memory_space<vmem>>, vector<1x8x128xf32>
      tpu.vector_store %arg13[%c0_16, %c0_17, %c0_18], %20 {strides = array<i32>} : memref<1x8x128xf32, #tpu.memory_space<vmem>>, vector<1x8x128xf32>,
    } else {
    }
    %c0_i32_2 = arith.constant 0 : i32
    %5 = arith.cmpi eq, %arg2, %c0_i32_2 : i32
    %6 = arith.extui %5 : i1 to i32
    %c0_i32_3 = arith.constant 0 : i32
    %7 = arith.cmpi ne, %6, %c0_i32_3 : i32
    scf.if %7 {
      %cst_15 = arith.constant 0.000000e+00 : f32
      %20 = vector.broadcast %cst_15 : f32 to vector<128x128xf32>
      %c0_16 = arith.constant 0 : index
      %c0_17 = arith.constant 0 : index
      %21 = vector.load %arg14[%c0_16, %c0_17] : memref<128x128xf32, #tpu.memory_space<vmem>>, vector<128x128xf32>
      tpu.vector_store %arg14[%c0_16, %c0_17], %20 {strides = array<i32>} : memref<128x128xf32, #tpu.memory_space<vmem>>, vector<128x128xf32>,
    } else {
    }
    %c0 = arith.constant 0 : index
    %c0_4 = arith.constant 0 : index
    %8 = vector.load %arg4[%c0, %c0_4] : memref<128x128xbf16, #tpu.memory_space<vmem>>, vector<128x128xbf16>
    %c0_5 = arith.constant 0 : index
    %c0_6 = arith.constant 0 : index
    %9 = vector.load %arg14[%c0_5, %c0_6] : memref<128x128xf32, #tpu.memory_space<vmem>>, vector<128x128xf32>
    %c0_7 = arith.constant 0 : index
    %c0_8 = arith.constant 0 : index
    %10 = vector.load %arg5[%c0_7, %c0_8] : memref<128x128xbf16, #tpu.memory_space<vmem>>, vector<128x128xbf16>
    %cst = arith.constant dense<0.000000e+00> : vector<128x128xf32>
    %11 = tpu.matmul %8, %10, %cst {dimension_numbers = #tpu.dot_dimension_numbers<[1], [0], [0], [1], [0, 0, 1, 1], [], []>} : vector<128x128xbf16>, vector<128x128xbf16>, vector<128x128xf32> -> vector<128x128xf32>
    %c0_9 = arith.constant 0 : index
    %c0_10 = arith.constant 0 : index
    %12 = vector.load %arg6[%c0_9, %c0_10] : memref<128x128xbf16, #tpu.memory_space<vmem>>, vector<128x128xbf16>
    %cst_11 = arith.constant dense<0.000000e+00> : vector<128x128xf32>
    %13 = tpu.matmul %8, %12, %cst_11 {dimension_numbers = #tpu.dot_dimension_numbers<[1], [0], [0], [1], [0, 0, 1, 1], [], []>} : vector<128x128xbf16>, vector<128x128xbf16>, vector<128x128xf32> -> vector<128x128xf32>
    %14 = arith.addf %11, %13 : vector<128x128xf32>
    %15 = arith.addf %9, %14 : vector<128x128xf32>
    %c0_12 = arith.constant 0 : index
    %c0_13 = arith.constant 0 : index
    %16 = vector.load %arg14[%c0_12, %c0_13] : memref<128x128xf32, #tpu.memory_space<vmem>>, vector<128x128xf32>
    tpu.vector_store %arg14[%c0_12, %c0_13], %15 {strides = array<i32>} : memref<128x128xf32, #tpu.memory_space<vmem>>, vector<128x128xf32>,
    %c2_i32 = arith.constant 2 : i32
    %17 = arith.cmpi eq, %arg2, %c2_i32 : i32
    %18 = arith.extui %17 : i1 to i32
    %c0_i32_14 = arith.constant 0 : i32
    %19 = arith.cmpi ne, %18, %c0_i32_14 : i32
    scf.if %19 {
      %c0_15 = arith.constant 0 : index
      %20 = memref.load %arg3[%c0_15] : memref<1xf32, #tpu.memory_space<smem>>
      %cst_16 = arith.constant 1.000000e+00 : f32
      %21 = arith.addf %cst_16, %20 : f32
      %c0_17 = arith.constant 0 : index
      %c0_18 = arith.constant 0 : index
      %22 = vector.load %arg7[%c0_17, %c0_18] : memref<128x128xf32, #tpu.memory_space<vmem>>, vector<128x128xf32>
      %23 = vector.broadcast %21 : f32 to vector<128x128xf32>
      %24 = arith.mulf %23, %22 : vector<128x128xf32>
      %c0_19 = arith.constant 0 : index
      %c0_20 = arith.constant 0 : index
      %25 = vector.load %arg14[%c0_19, %c0_20] : memref<128x128xf32, #tpu.memory_space<vmem>>, vector<128x128xf32>
      %26 = arith.addf %24, %25 : vector<128x128xf32>
      %c0_21 = arith.constant 0 : index
      %c0_22 = arith.constant 0 : index
      %27 = vector.load %arg8[%c0_21, %c0_22] : memref<128x128xf32, #tpu.memory_space<vmem>>, vector<128x128xf32>
      %cst_23 = arith.constant dense<0.000000e+00> : vector<128x128xf32>
      %28 = tpu.matmul %26, %27, %cst_23 {dimension_numbers = #tpu.dot_dimension_numbers<[1], [0], [0], [1], [0, 0, 1, 1], [], []>} : vector<128x128xf32>, vector<128x128xf32>, vector<128x128xf32> -> vector<128x128xf32>
      %c0_24 = arith.constant 0 : index
      %c0_25 = arith.constant 0 : index
      %29 = vector.load %arg9[%c0_24, %c0_25] : memref<1x128xf32, #tpu.memory_space<vmem>>, vector<1x128xf32>
      %30 = vector.broadcast %29 : vector<1x128xf32> to vector<128x128xf32>
      %31 = arith.addf %28, %30 : vector<128x128xf32>
      %cst_26 = arith.constant 0.000000e+00 : f32
      %32 = vector.broadcast %cst_26 : f32 to vector<128x128xf32>
      %33 = arith.maximumf %31, %32 : vector<128x128xf32>
      %c0_27 = arith.constant 0 : index
      %c0_28 = arith.constant 0 : index
      %34 = vector.load %arg10[%c0_27, %c0_28] : memref<128x128xf32, #tpu.memory_space<vmem>>, vector<128x128xf32>
      %cst_29 = arith.constant dense<0.000000e+00> : vector<128x128xf32>
      %35 = tpu.matmul %33, %34, %cst_29 {dimension_numbers = #tpu.dot_dimension_numbers<[1], [0], [0], [1], [0, 0, 1, 1], [], []>} : vector<128x128xf32>, vector<128x128xf32>, vector<128x128xf32> -> vector<128x128xf32>
      %c0_30 = arith.constant 0 : index
      %c0_31 = arith.constant 0 : index
      %36 = vector.load %arg11[%c0_30, %c0_31] : memref<1x128xf32, #tpu.memory_space<vmem>>, vector<1x128xf32>
      %37 = vector.broadcast %36 : vector<1x128xf32> to vector<128x128xf32>
      %38 = arith.addf %35, %37 : vector<128x128xf32>
      %39 = arith.negf %38 : vector<128x128xf32>
      %40 = math.exp %39 : vector<128x128xf32>
      %cst_32 = arith.constant 1.000000e+00 : f32
      %41 = vector.broadcast %cst_32 : f32 to vector<128x128xf32>
      %42 = arith.addf %41, %40 : vector<128x128xf32>
      %43 = arith.divf %41, %42 : vector<128x128xf32>
      %44 = arith.mulf %38, %43 : vector<128x128xf32>
      %c0_33 = arith.constant 0 : index
      %c0_34 = arith.constant 0 : index
      %45 = vector.load %arg12[%c0_33, %c0_34] : memref<8x128xf32, #tpu.memory_space<vmem>>, vector<8x128xf32>
      %cst_35 = arith.constant dense<0.000000e+00> : vector<8x128xf32>
      %46 = tpu.matmul %45, %44, %cst_35 {dimension_numbers = #tpu.dot_dimension_numbers<[1], [0], [0], [1], [0, 0, 1, 1], [], []>} : vector<8x128xf32>, vector<128x128xf32>, vector<8x128xf32> -> vector<8x128xf32>
      %c0_36 = arith.constant 0 : index
      %c0_37 = arith.constant 0 : index
      %c0_38 = arith.constant 0 : index
      %47 = vector.load %arg13[%c0_36, %c0_37, %c0_38] : memref<1x8x128xf32, #tpu.memory_space<vmem>>, vector<1x8x128xf32>
      %48 = vector.shape_cast %46 : vector<8x128xf32> to vector<1x8x128xf32>
      %49 = arith.addf %47, %48 : vector<1x8x128xf32>
      %c0_39 = arith.constant 0 : index
      %c0_40 = arith.constant 0 : index
      %c0_41 = arith.constant 0 : index
      %50 = vector.load %arg13[%c0_39, %c0_40, %c0_41] : memref<1x8x128xf32, #tpu.memory_space<vmem>>, vector<1x8x128xf32>
      tpu.vector_store %arg13[%c0_39, %c0_40, %c0_41], %49 {strides = array<i32>} : memref<1x8x128xf32, #tpu.memory_space<vmem>>, vector<1x8x128xf32>,
    } else {
    }
    return
  }
  func.func @transform_0(%arg0: i32, %arg1: i32, %arg2: i32) -> i32 {
    %c0_i32 = arith.constant 0 : i32
    %c0_i32_0 = arith.constant 0 : i32
    return %c0_i32 : i32
  }
  func.func @transform_1(%arg0: i32, %arg1: i32, %arg2: i32) -> (i32, i32) {
    %c3_i32 = arith.constant 3 : i32
    %0 = arith.muli %arg0, %c3_i32 : i32
    %1 = arith.addi %0, %arg1 : i32
    %c0_i32 = arith.constant 0 : i32
    return %1, %arg2 : i32, i32
  }
  func.func @transform_2(%arg0: i32, %arg1: i32, %arg2: i32) -> (i32, i32) {
    %c0_i32 = arith.constant 0 : i32
    %c0_i32_0 = arith.constant 0 : i32
    return %arg2, %c0_i32 : i32, i32
  }
  func.func @transform_3(%arg0: i32, %arg1: i32, %arg2: i32) -> (i32, i32) {
    %c0_i32 = arith.constant 0 : i32
    %c0_i32_0 = arith.constant 0 : i32
    return %arg2, %c0_i32 : i32, i32
  }
  func.func @transform_4(%arg0: i32, %arg1: i32, %arg2: i32) -> (i32, i32) {
    %c3_i32 = arith.constant 3 : i32
    %0 = arith.muli %arg0, %c3_i32 : i32
    %1 = arith.addi %0, %arg1 : i32
    %c0_i32 = arith.constant 0 : i32
    %c0_i32_0 = arith.constant 0 : i32
    return %1, %c0_i32 : i32, i32
  }
  func.func @transform_5(%arg0: i32, %arg1: i32, %arg2: i32) -> (i32, i32) {
    %c0_i32 = arith.constant 0 : i32
    %c0_i32_0 = arith.constant 0 : i32
    %c0_i32_1 = arith.constant 0 : i32
    return %c0_i32, %c0_i32_0 : i32, i32
  }
  func.func @transform_6(%arg0: i32, %arg1: i32, %arg2: i32) -> (i32, i32) {
    %c0_i32 = arith.constant 0 : i32
    %c0_i32_0 = arith.constant 0 : i32
    %c0_i32_1 = arith.constant 0 : i32
    return %c0_i32, %c0_i32_0 : i32, i32
  }
  func.func @transform_7(%arg0: i32, %arg1: i32, %arg2: i32) -> (i32, i32) {
    %c0_i32 = arith.constant 0 : i32
    %c0_i32_0 = arith.constant 0 : i32
    %c0_i32_1 = arith.constant 0 : i32
    return %c0_i32, %c0_i32_0 : i32, i32
  }
  func.func @transform_8(%arg0: i32, %arg1: i32, %arg2: i32) -> (i32, i32) {
    %c0_i32 = arith.constant 0 : i32
    %c0_i32_0 = arith.constant 0 : i32
    %c0_i32_1 = arith.constant 0 : i32
    return %c0_i32, %c0_i32_0 : i32, i32
  }
  func.func @transform_9(%arg0: i32, %arg1: i32, %arg2: i32) -> (i32, i32) {
    %c3_i32 = arith.constant 3 : i32
    %0 = arith.muli %arg0, %c3_i32 : i32
    %1 = arith.addi %0, %arg1 : i32
    %c0_i32 = arith.constant 0 : i32
    %c0_i32_0 = arith.constant 0 : i32
    return %c0_i32, %1 : i32, i32
  }
  func.func @transform_10(%arg0: i32, %arg1: i32, %arg2: i32) -> (i32, i32, i32) {
    %c0_i32 = arith.constant 0 : i32
    %c0_i32_0 = arith.constant 0 : i32
    %c0_i32_1 = arith.constant 0 : i32
    return %arg0, %c0_i32, %c0_i32_0 : i32, i32, i32
  }
}

</mosaic_0001>

<bundles_post_ra>
// kernel: tpu_custom_call.1
= control target key start
LH: loop header
LB: loop body
LE: loop exit
PB: predicated region body
PF: predicated region fallthrough
CT: control target
= control target key end

     0   :  { %s3690_s0 = inlined_call_operand.<no memory space> [shape: f32[1], index: 0, kind: input, shape index: {}]   ;;  %s3691_s1 = inlined_call_operand.hbm [shape: bf16[384,384], index: 1, kind: input, shape index: {}]   ;;  %s3692_s2 = inlined_call_operand.hbm [shape: bf16[384,128], index: 2, kind: input, shape index: {}]   ;;  %s3693_s3 = inlined_call_operand.hbm [shape: bf16[384,128], index: 3, kind: input, shape index: {}]   ;;  %s3694_s4 = inlined_call_operand.hbm [shape: f32[384,128], index: 4, kind: input, shape index: {}]   ;;  %s3695_s5 = inlined_call_operand.hbm [shape: f32[128,128], index: 5, kind: input, shape index: {}]   ;;  %s3696_s6 = inlined_call_operand.vmem [shape: f32[1,128], index: 6, kind: input, shape index: {}]   ;;  %s3697_s7 = inlined_call_operand.hbm [shape: f32[128,128], index: 7, kind: input, shape index: {}]   ;;  %s3698_s8 = inlined_call_operand.vmem [shape: f32[1,128], index: 8, kind: input, shape index: {}]   ;;  %s3699_s9 = inlined_call_operand.vmem [shape: f32[8,384], index: 9, kind: input, shape index: {}]   ;;  %s3700_s10 = inlined_call_operand.hbm [shape: f32[1,8,128], index: 10, kind: output, shape index: {}]  }
   0x1   :  { %3730 = sst [smem:[#allocation33_spill]] %s3691_s1 }
   0x2   :  { %3731 = sst [smem:[#allocation34_spill]] %s3692_s2 }
   0x3   :  { %3732 = sst [smem:[#allocation35_spill]] %s3694_s4 }
   0x4   :  { %3733 = sst [smem:[#allocation36_spill]] %s3695_s5 }
   0x5   :  { %3734 = sst [smem:[#allocation37_spill]] %s3696_s6 }
   0x6   :  { %3735 = sst [smem:[#allocation38_spill]] %s3698_s8 }
   0x7   :  { %3736 = sst [smem:[#allocation39_spill]] %s3699_s9 }
   0x8   :  { %3737 = sst [smem:[#allocation40_spill]] %s3700_s10 }
   0x9   :  { %15 = sst [smem:[#allocation3]] %s3690_s0 }
   0xa   :  { %16 = vsyncpa [#allocation5], 0 }
   0xb   :  { %18 = vsyncpa [#allocation5 + $0x1], 0 }
   0xc   :  { %19 = vsyncpa [#allocation8], 0 }
   0xd   :  { %21 = vsyncpa [#allocation8 + $0x1], 0 }
   0xe   :  { %22 = vsyncpa [#allocation11], 0 }
   0xf   :  { %24 = vsyncpa [#allocation11 + $0x1], 0 }
  0x10   :  { %25 = vsyncpa [#allocation14], 0 }
  0x11   :  { %26 = vsyncpa [#allocation6], 0  ;;  %s3020_s15 = smov 0   ;;  %s3022_s16 = smov 0  }
  0x12   :  { %s3024_s17 = smov 0   ;;  %s3026_s18 = smov 0  }
  0x13   :  { %s3028_s19 = smov 0   ;;  %s3030_s20 = smov 0  }
  0x14   :  { %s3032_s0 = smov 0   ;;  %s3034_s21 = smov 0  }
  0x15   :  { %s3036_s22 = smov 0   ;;  %s3038_s23 = smov 0  }
  0x16   :  { %s3040_s24 = smov 0   ;;  %s3042_s25 = smov 0  }
  0x17   :  { %s3044_s26 = smov 0   ;;  %s3046_s27 = smov 0  }
  0x18 LB: > { %3738 = sst [smem:[#allocation22_spill]] %s2891_s15  ;;  %s3091_s28 = sadd.s32 4294967295, %s2943_s27   ;;  %s2943_s27 = sphi %s3046_s27, %s32_s27   ;;  %s2939_s26 = sphi %s3044_s26, %s3819_s26   ;;  %s2935_s25 = sphi %s3042_s25, %s3818_s25   ;;  %s2931_s24 = sphi %s3040_s24, %s3817_s24   ;;  %s2927_s23 = sphi %s3038_s23, %s3816_s23   ;;  %s2923_s22 = sphi %s3036_s22, %s3815_s22   ;;  %s2919_s21 = sphi %s3034_s21, %s3814_s21   ;;  %s2915_s0 = sphi %s3032_s0, %s3813_s0   ;;  %s2911_s20 = sphi %s3030_s20, %s3808_s20   ;;  %s2907_s19 = sphi %s3028_s19, %s3807_s19   ;;  %s2903_s18 = sphi %s3026_s18, %s3806_s18   ;;  %s2899_s17 = sphi %s3024_s17, %s3812_s17   ;;  %s2895_s16 = sphi %s3022_s16, %s3811_s16   ;;  %s2891_s15 = sphi %s3020_s15, %s3805_s15  }
  0x19   : > { %3739 = sst [smem:[#allocation23_spill]] %s2895_s16  ;;  %p1842_p0 = scmp.ge.s32.totalorder %s2943_s27, 1 }
  0x1a   : > { %3740 = sst [smem:[#allocation24_spill]] %s2907_s19  ;;  %p3702_p1 = scmp.eq.s32.totalorder %s3091_s28, 0 }
  0x1b   : > { %3741 = sst [smem:[#allocation25_spill]] %s2911_s20  ;;  %p331_p2 = scmp.lt.s32.totalorder %s2943_s27, 10 }
  0x1c   : > { %3742 = sst [smem:[#allocation26_spill]] %s2927_s23  ;;  %s2945_s30 = smov [#allocation12]  }
  0x1d   : > { %3743 = sst [smem:[#allocation27_spill]] %s2931_s24  ;;  %p3096_p3 = pnand %p1842_p0, %p331_p2 }
  0x1e   : > { %s346_s11 = sshll.u32 %s2945_s30, 4  ;;  %s3747_s5 = sld [smem:[#allocation36_spill]]  ;;  %s347_s11 = int_to_ptr.vmem [resolvable:$true] %s346_s11 }
  0x1f   : > { %s3744_s29 = scalar_select %p3096_p3, 1, 0 }
  0x20   : > { %p2367_p4 = pneg %p3096_p3 }
  0x21   : > { %3745 = sst [smem:[#allocation28_spill]] %s3744_s29 }
  0x22   : > { %p3104_p5 = pnand %p2367_p4, %p3702_p1 }
  0x24   : > { %s2607_s10 = scalar_lea.hbm %s3747_s5, 2048  ;;  %p3719_p7 = pneg %p3104_p5 }
  0x25   : > { %p2608_p6 = scmp.ne.s32.totalorder %s3747_s5, %s2607_s10  ;;  %p2614_p10 = scmp.lt.u32.totalorder %s2607_s10, %s3747_s5 }
  0x27   : > { %p2610_p8 = pnand %p3719_p7, %p2608_p6 }
  0x29   : > { %p2611_p9 = pneg %p2610_p8 }
  0x2b   : > { %p2616_p11 = pnand %p2614_p10, %p2611_p9 }
  0x2d   : > { %2619 = shalt.err (!%p2616_p11)
}
  0x2e   : > { %s2620_s13 = scalar_lea.vmem %s347_s11, 2048  ;;  %p2628_p2 = scmp.lt.s32.totalorder %s347_s11, %s347_s11 }
  0x2f   : > { %p2621_p12 = scmp.ne.s32.totalorder %s347_s11, %s2620_s13  ;;  %p2629_p4 = scmp.lt.s32.totalorder %s2620_s13, %s2620_s13 }
  0x31   : > { %p2623_p13 = pnand %p2621_p12, %p3719_p7  ;;  %p2630_p1 = por %p2629_p4, %p2628_p2 }
  0x33   : > { %p2624_p0 = pneg %p2623_p13 }
  0x35   : > { %p2631_p3 = pnand %p2630_p1, %p2624_p0 }
  0x37   : > { %2634 = shalt.err (!%p2631_p3)
}
  0x38   : > { %s3704_s6 = smov 128   ;;  %s3706_s8 = smov 8  }
  0x39   : > { %2370 = dma.hbm_to_vmem [thread:$0]  (!%p3104_p5), %s3747_s5, 2048, %s347_s11, [#allocation11], %s3704_s6, %s3704_s6, %s3706_s8  }
  0x3a   : > { %s44_s14 = sadd.s32 1, %s2935_s25  ;;  %s47_s30 = sadd.s32 1, %s2939_s26 }
  0x3b   : > { %p45_p1 = scmp.ge.s32.totalorder %s44_s14, 3  ;;  %p3718_p3 = scmp.eq.s32.totalorder %s2943_s27, 0 }
  0x3c   : > { %s111_s13 = sadd.s32 1, %s2911_s20  ;;  %p118_p6 = scmp.ne.s32.totalorder %s2911_s20, %s2907_s19 }
  0x3d   : > { %s3821_s14 = smov (%p45_p1, %s44_s14), 0  ;;  %s3823_s30 = smov (!%p45_p1, %s47_s30), %s2939_s26 }
  0x3e   : > { %3748 = sst [smem:[#allocation29_spill]] %s3821_s14  ;;  %s81_s23 = ssub.s32 %s2935_s25, %s3821_s14 }
  0x3f   : > { %p49_p8 = scmp.ge.s32.totalorder %s3823_s30, 3  ;;  %p109_p9 = scmp.eq.s32.totalorder %s81_s23, 0 }
  0x40   : > { %p3146_p10 = por %p118_p6, %p3718_p3  ;;  %p124_p11 = scmp.ne.s32.totalorder %s2907_s19, %s2903_s18 }
  0x41   : > { %s3825_s30 = smov (%p49_p8, %s3823_s30), 0  ;;  %p3752_p12 = scmp.eq.s32.totalorder %s3091_s28, 0 }
  0x42   : > { %3750 = sst [smem:[#allocation30_spill]] %s3825_s30  ;;  %s3159_s10 = ssub.s32 %s2939_s26, %s3825_s30 }
  0x43   : > { %s3155_s9 = scalar_select %p109_p9, %s2911_s20, %s111_s13  }
  0x44   : > { %p3163_p13 = por %p124_p11, %p3752_p12  ;;  %s82_s8 = sor.u32 %s81_s23, %s3159_s10 }
  0x45   : > { %3751 = sst [smem:[#allocation31_spill]] %s3155_s9  ;;  %p3169_p2 = scmp.eq.s32.totalorder %s82_s8, 0 }
  0x46   : > { %s3753_s6 = scalar_select %p3163_p13, 1, 0 }
  0x47   : > { %s3755_s18 = scalar_select %p3169_p2, 1, 0 }
  0x48   : > { %3754 = sst [smem:[#allocation32_spill]] %s3753_s6  ;;  %p3717_p4 = scmp.lt.s32.totalorder %s2943_s27, 9 }
  0x49   : > { %s406_s13 = sand.u32 1, %s2911_s20   ;;  %s1915_s30 = sshll.u32 %s2935_s25, 10 }
  0x4a   : > { %s1850_s14 = sshll.u32 %s406_s13, 6  ;;  %s3756_s2 = sld [smem:[#allocation34_spill]] }
  0x4b   : > { %s408_s23 = scalar_lea.vmem [#allocation7], %s1850_s14  ;;  %p3188_p1 = pnand %p3717_p4, %p3146_p10 }
  0x4c   : > { %s415_s6 = sshll.u32 %s408_s23, 4  ;;  %s3195_s24 = scalar_lea.hbm %s3693_s3, %s1915_s30  ;;  %s3182_s6 = int_to_ptr.vmem [resolvable:$true] %s415_s6 }
  0x4d   : > { %s3757_s8 = scalar_select %p3188_p1, 1, 0 }
  0x4e   : > { %s429_s9 = scalar_lea.vmem [#allocation9], %s1850_s14  ;;  %s3758_s23 = sand.u32 1, %s2943_s27  }
  0x4f   : > { %s3197_s20 = sshll.u32 %s429_s9, 4  ;;  %s3201_s29 = scalar_lea.sflag [#allocation8], %s3758_s23  ;;  %s3233_s20 = int_to_ptr.vmem [resolvable:$true] %s3197_s20 }
  0x50   : > { %s3180_s19 = scalar_lea.hbm %s3756_s2, %s1915_s30  ;;  %p3722_p8 = pneg %p3188_p1 }
  0x51   : > { %s2635_s4 = scalar_lea.hbm %s3180_s19, 1024  ;;  %s2640_s13 = scalar_lea.hbm %s3756_s2, 3072 }
  0x52   : > { %p2636_p6 = scmp.ne.s32.totalorder %s3180_s19, %s2635_s4  ;;  %p2641_p11 = scmp.lt.u32.totalorder %s3180_s19, %s3756_s2 }
  0x53   : > { %p2642_p12 = scmp.lt.u32.totalorder %s2640_s13, %s2635_s4  ;;  %p2644_p4 = scmp.lt.u32.totalorder %s2635_s4, %s3180_s19 }
  0x54   : > { %p2638_p9 = pnand %p3722_p8, %p2636_p6 }
  0x55   : > { %p2643_p0 = por %p2642_p12, %p2641_p11 }
  0x56   : > { %p2639_p10 = pneg %p2638_p9 }
  0x57   : > { %p2645_p3 = por %p2644_p4, %p2643_p0 }
  0x59   : > { %p2646_p7 = pnand %p2645_p3, %p2639_p10 }
  0x5b   : > { %2649 = shalt.err (!%p2646_p7)
}
  0x5c   : > { %s2650_s14 = scalar_lea.vmem %s3182_s6, 1024  ;;  %s2948_s9 = smov [#allocation7]  }
  0x5d   : > { %p2651_p6 = scmp.ne.s32.totalorder %s3182_s6, %s2650_s14  ;;  %s2655_s23 = sshll.u32 %s2948_s9, 4  ;;  %s2656_s23 = int_to_ptr.vmem [resolvable:$false] %s2655_s23 }
  0x5e   : > { %s2657_s15 = scalar_lea.vmem %s2656_s23, 2048  ;;  %p2658_p2 = scmp.lt.s32.totalorder %s3182_s6, %s2656_s23 }
  0x5f   : > { %p2653_p9 = pnand %p2651_p6, %p3722_p8  ;;  %p2659_p11 = scmp.lt.s32.totalorder %s2657_s15, %s2650_s14 }
  0x61   : > { %p2654_p13 = pneg %p2653_p9  ;;  %p2660_p12 = por %p2659_p11, %p2658_p2 }
  0x63   : > { %p2661_p0 = pnand %p2660_p12, %p2654_p13 }
  0x65   : > { %2664 = shalt.err (!%p2661_p0)
}
  0x66   : > { %s3725_s4 = smov 64   ;;  %s3727_s11 = smov 4  }
  0x67   : > { %2380 = dma.hbm_to_vmem [thread:$0]  (!%p3188_p1), %s3180_s19, 1024, %s3182_s6, %s3201_s29, %s3725_s4, %s3725_s4, %s3727_s11  }
  0x68   : > { %s2951_s5 = smov [#allocation13]   ;;  %s2665_s9 = scalar_lea.hbm %s3697_s7, 2048 }
  0x69   : > { %s362_s13 = sshll.u32 %s2951_s5, 4  ;;  %p2666_p7 = scmp.ne.s32.totalorder %s3697_s7, %s2665_s9  ;;  %s363_s13 = int_to_ptr.vmem [resolvable:$true] %s362_s13 }
  0x6a   : > { %p3759_p3 = pneg %p3104_p5  ;;  %p2672_p4 = scmp.lt.u32.totalorder %s2665_s9, %s3697_s7 }
  0x6c   : > { %p2668_p13 = pnand %p2666_p7, %p3759_p3 }
  0x6e   : > { %p2669_p2 = pneg %p2668_p13 }
  0x70   : > { %p2674_p10 = pnand %p2672_p4, %p2669_p2 }
  0x72   : > { %2677 = shalt.err (!%p2674_p10)
}
  0x73   : > { %s2678_s19 = scalar_lea.vmem %s363_s13, 2048  ;;  %p3760_p9 = pmov %p3759_p3 }
  0x74   : > { %p2679_p6 = scmp.ne.s32.totalorder %s363_s13, %s2678_s19  ;;  %p2686_p0 = scmp.lt.s32.totalorder %s363_s13, %s363_s13 }
  0x75   : > { %p2687_p8 = scmp.lt.s32.totalorder %s2678_s19, %s2678_s19 }
  0x76   : > { %p2681_p11 = pnand %p2679_p6, %p3760_p9 }
  0x77   : > { %p2688_p1 = por %p2687_p8, %p2686_p0 }
  0x78   : > { %p2682_p12 = pneg %p2681_p11 }
  0x7a   : > { %p2689_p3 = pnand %p2688_p1, %p2682_p12 }
  0x7c   : > { %2692 = shalt.err (!%p2689_p3)
}
  0x7d   : > { %s3761_s6 = smov 8   ;;  %s3762_s5 = smov 128  }
  0x7e   : > { %2373 = dma.hbm_to_vmem [thread:$0]  (!%p3104_p5), %s3697_s7, 2048, %s363_s13, [#allocation14], %s3762_s5, %s3762_s5, %s3761_s6  }
  0x7f   : > { %s85_s12 = sadd.s32 1, %s2923_s22  ;;  %p3763_p1 = scmp.ne.s32.totalorder %s3755_s18, 0 }
  0x80   : > { %p92_p8 = scmp.ne.s32.totalorder %s2923_s22, %s2919_s21  ;;  %p98_p7 = scmp.ne.s32.totalorder %s2919_s21, %s2915_s0 }
  0x81   : > { %s3262_s30 = scalar_select %p3763_p1, %s2923_s22, %s85_s12  }
  0x82   : > { %s379_s14 = sand.u32 1, %s2923_s22   ;;  %s2346_s9 = smul.u32 48, %s2939_s26 }
  0x83   : > { %p3764_p13 = scmp.eq.s32.totalorder %s2943_s27, 0  ;;  %p3765_p4 = scmp.eq.s32.totalorder %s3091_s28, 0 }
  0x84   : > { %s1846_s13 = sshll.u32 %s379_s14, 6  ;;  %s391_s18 = sadd.s32 %s2935_s25, %s2346_s9 }
  0x85   : > { %p94_p2 = por %p3764_p13, %p92_p8  ;;  %p3274_p10 = por %p3765_p4, %p98_p7 }
  0x86   : > { %s1849_s15 = sshll.u32 %s391_s18, 6  ;;  %s383_s19 = scalar_lea.vmem [#allocation4], %s1846_s13 }
  0x87   : > { %s3766_s23 = scalar_select %p3274_p10, 1, 0 }
  0x88   : > { %s394_s2 = sshll.u32 %s383_s19, 4  ;;  %s3767_s1 = sld [smem:[#allocation33_spill]]  ;;  %s3286_s2 = int_to_ptr.vmem [resolvable:$true] %s394_s2 }
  0x89   : > { %p3768_p5 = scmp.lt.s32.totalorder %s2943_s27, 9  ;;  %s2693_s11 = scalar_lea.hbm %s3195_s24, 1024 }
  0x8a   : > { %p2694_p9 = scmp.ne.s32.totalorder %s3195_s24, %s2693_s11  ;;  %p3770_p11 = scmp.ne.s32.totalorder %s3757_s8, 0 }
  0x8b   : > { %p3290_p6 = pnand %p3768_p5, %p94_p2  ;;  %s2698_s18 = scalar_lea.hbm %s3693_s3, 3072 }
  0x8c   : > { %p3771_p12 = pneg %p3770_p11  ;;  %p2699_p1 = scmp.lt.u32.totalorder %s3195_s24, %s3693_s3 }
  0x8d   : > { %p2700_p8 = scmp.lt.u32.totalorder %s2698_s18, %s2693_s11  ;;  %p2702_p13 = scmp.lt.u32.totalorder %s2693_s11, %s3195_s24 }
  0x8e   : > { %s3284_s0 = scalar_lea.hbm %s3767_s1, %s1849_s15  ;;  %p2696_p0 = pnand %p2694_p9, %p3771_p12 }
  0x8f   : > { %p2701_p7 = por %p2700_p8, %p2699_p1 }
  0x90   : > { %p2697_p3 = pneg %p2696_p0 }
  0x91   : > { %p2703_p2 = por %p2702_p13, %p2701_p7 }
  0x93   : > { %p2704_p4 = pnand %p2703_p2, %p2697_p3 }
  0x95   : > { %2707 = shalt.err (!%p2704_p4)
}
  0x96   : > { %s2708_s16 = scalar_lea.vmem %s3233_s20, 1024  ;;  %p3772_p9 = pmov %p3771_p12 }
  0x97   : > { %p2709_p5 = scmp.ne.s32.totalorder %s3233_s20, %s2708_s16  ;;  %s2952_s12 = smov [#allocation9]  }
  0x98   : > { %s2713_s9 = sshll.u32 %s2952_s12, 4  ;;  %s2714_s9 = int_to_ptr.vmem [resolvable:$false] %s2713_s9 }
  0x99   : > { %p2711_p12 = pnand %p2709_p5, %p3772_p9  ;;  %s2715_s13 = scalar_lea.vmem %s2714_s9, 2048 }
  0x9a   : > { %p2716_p10 = scmp.lt.s32.totalorder %s3233_s20, %s2714_s9  ;;  %p2717_p1 = scmp.lt.s32.totalorder %s2715_s13, %s2708_s16 }
  0x9b   : > { %p2712_p0 = pneg %p2711_p12 }
  0x9c   : > { %p2718_p8 = por %p2717_p1, %p2716_p10 }
  0x9e   : > { %p2719_p7 = pnand %p2718_p8, %p2712_p0 }
  0xa0   : > { %2722 = shalt.err (!%p2719_p7)
}
  0xa1   : > { %s3773_s11 = smov 4   ;;  %s3774_s18 = smov 64  }
  0xa2   : > { %2383 = dma.hbm_to_vmem [thread:$0]  (!%p3770_p11), %s3195_s24, 1024, %s3233_s20, %s3201_s29, %s3774_s18, %s3774_s18, %s3773_s11  }
  0xa3   : > { %s3323_s19 = scalar_lea.sflag [#allocation5], %s379_s14  ;;  %s2723_s15 = scalar_lea.hbm %s3284_s0, 1024 }
  0xa4   : > { %p2724_p10 = scmp.ne.s32.totalorder %s3284_s0, %s2723_s15  ;;  %p2725_p3 = pneg %p3290_p6 }
  0xa5   : > { %s2728_s12 = scalar_lea.hbm %s3767_s1, 9216  ;;  %p2729_p4 = scmp.lt.u32.totalorder %s3284_s0, %s3767_s1 }
  0xa6   : > { %p2726_p13 = pnand %p2725_p3, %p2724_p10  ;;  %p2730_p11 = scmp.lt.u32.totalorder %s2728_s12, %s2723_s15 }
  0xa7   : > { %p2732_p9 = scmp.lt.u32.totalorder %s2723_s15, %s3284_s0 }
  0xa8   : > { %p2727_p2 = pneg %p2726_p13  ;;  %p2731_p5 = por %p2730_p11, %p2729_p4 }
  0xaa   : > { %p2733_p12 = por %p2732_p9, %p2731_p5 }
  0xac   : > { %p2734_p0 = pnand %p2733_p12, %p2727_p2 }
  0xae   : > { %2737 = shalt.err (!%p2734_p0)
}
  0xaf   : > { %s2738_s20 = scalar_lea.vmem %s3286_s2, 1024  ;;  %s2953_s29 = smov [#allocation4]  }
  0xb0   : > { %p2739_p1 = scmp.ne.s32.totalorder %s3286_s2, %s2738_s20  ;;  %s2743_s24 = sshll.u32 %s2953_s29, 4  ;;  %s2744_s24 = int_to_ptr.vmem [resolvable:$false] %s2743_s24 }
  0xb1   : > { %s2745_s14 = scalar_lea.vmem %s2744_s24, 2048  ;;  %p2746_p10 = scmp.lt.s32.totalorder %s3286_s2, %s2744_s24 }
  0xb2   : > { %p2741_p8 = pnand %p2739_p1, %p2725_p3  ;;  %p2747_p13 = scmp.lt.s32.totalorder %s2745_s14, %s2738_s20 }
  0xb4   : > { %p2742_p7 = pneg %p2741_p8  ;;  %p2748_p4 = por %p2747_p13, %p2746_p10 }
  0xb6   : > { %p2749_p11 = pnand %p2748_p4, %p2742_p7 }
  0xb8   : > { %2752 = shalt.err (!%p2749_p11)
}
  0xb9   : > { %s2954_s15 = smov 192   ;;  %s3775_s8 = sld [smem:[#allocation23_spill]] }
  0xba   : > { %s3776_s16 = sld [smem:[#allocation22_spill]]  ;;  %s167_s4 = sadd.s32 1, %s2899_s17 }
  0xbb   : > { %2377 = dma.hbm_to_vmem [thread:$0]  (!%p3290_p6), %s3284_s0, 1024, %s3286_s2, %s3323_s19, %s2954_s15, %s3774_s18, %s3773_s11  }
  0xbc   : > { %p3777_p3 = scmp.eq.s32.totalorder %s3159_s10, 0  ;;  %s448_s9 = sand.u32 1, %s2899_s17  }
  0xbd   : > { %s1917_s13 = sshll.u32 %s2939_s26, 11  ;;  %p3778_p9 = scmp.eq.s32.totalorder %s2943_s27, 0 }
  0xbe   : > { %s3357_s12 = scalar_select %p3777_p3, %s2899_s17, %s167_s4  }
  0xbf   : > { %p174_p2 = scmp.ne.s32.totalorder %s2899_s17, %s3775_s8  ;;  %p3779_p0 = scmp.eq.s32.totalorder %s3091_s28, 0 }
  0xc0   : > { %p180_p5 = scmp.ne.s32.totalorder %s3775_s8, %s3776_s16  ;;  %s1856_s29 = sshll.u32 %s448_s9, 7 }
  0xc1   : > { %p176_p12 = por %p174_p2, %p3778_p9  ;;  %s3781_s1 = sld [smem:[#allocation35_spill]] }
  0xc2   : > { %p3369_p1 = por %p180_p5, %p3779_p0  ;;  %p3782_p6 = scmp.lt.s32.totalorder %s2943_s27, 9 }
  0xc3   : > { %s450_s0 = scalar_lea.vmem [#allocation10], %s1856_s29  ;;  %s3784_s18 = sand.u32 1, %s2943_s27  }
  0xc4   : > { %p3380_p8 = pnand %p3782_p6, %p176_p12  ;;  %s459_s11 = sshll.u32 %s450_s0, 4  ;;  %s3384_s11 = int_to_ptr.vmem [resolvable:$true] %s459_s11 }
  0xc5   : > { %s3388_s19 = scalar_lea.sflag [#allocation11], %s3784_s18 }
  0xc6   : > { %p2755_p10 = pneg %p3380_p8 }
  0xc7   : > { %s3376_s2 = scalar_lea.hbm %s3781_s1, %s1917_s13  ;;  %s2758_s4 = scalar_lea.hbm %s3781_s1, 6144 }
  0xc8   : > { %s2753_s15 = scalar_lea.hbm %s3376_s2, 2048  ;;  %p2759_p11 = scmp.lt.u32.totalorder %s3376_s2, %s3781_s1 }
  0xc9   : > { %p2754_p7 = scmp.ne.s32.totalorder %s3376_s2, %s2753_s15  ;;  %p2760_p3 = scmp.lt.u32.totalorder %s2758_s4, %s2753_s15 }
  0xca   : > { %p2762_p5 = scmp.lt.u32.totalorder %s2753_s15, %s3376_s2 }
  0xcb   : > { %p2756_p13 = pnand %p2755_p10, %p2754_p7  ;;  %p2761_p2 = por %p2760_p3, %p2759_p11 }
  0xcd   : > { %p2757_p4 = pneg %p2756_p13  ;;  %p2763_p9 = por %p2762_p5, %p2761_p2 }
  0xcf   : > { %p2764_p12 = pnand %p2763_p9, %p2757_p4 }
  0xd1   : > { %2767 = shalt.err (!%p2764_p12)
}
  0xd2   : > { %s2768_s29 = scalar_lea.vmem %s3384_s11, 2048  ;;  %s2955_s24 = smov [#allocation10]  }
  0xd3   : > { %p2769_p0 = scmp.ne.s32.totalorder %s3384_s11, %s2768_s29  ;;  %s2773_s14 = sshll.u32 %s2955_s24, 4  ;;  %s2774_s14 = int_to_ptr.vmem [resolvable:$false] %s2773_s14 }
  0xd4   : > { %s2775_s0 = scalar_lea.vmem %s2774_s14, 4096  ;;  %p2776_p13 = scmp.lt.s32.totalorder %s3384_s11, %s2774_s14 }
  0xd5   : > { %p2771_p6 = pnand %p2769_p0, %p2755_p10  ;;  %p2777_p11 = scmp.lt.s32.totalorder %s2775_s0, %s2768_s29 }
  0xd7   : > { %p2772_p7 = pneg %p2771_p6  ;;  %p2778_p3 = por %p2777_p11, %p2776_p13 }
  0xd9   : > { %p2779_p2 = pnand %p2778_p3, %p2772_p7 }
  0xdb   : > { %2782 = shalt.err (!%p2779_p2)
}
  0xdc   : > { %2386 = dma.hbm_to_vmem [thread:$0]  (!%p3380_p8), %s3376_s2, 2048, %s3384_s11, %s3388_s19, %s3762_s5, %s3762_s5, %s3761_s6  }
  0xdd   : > { %s3785_s18 = sld [smem:[#allocation28_spill]] }
  0xe3   : > { %p3786_p10 = scmp.ne.s32.totalorder %s3785_s18, 0 }
  0xe4   : > { %s484_s15 = sand.u32 (!%p3786_p10), 1, %s2919_s21   ;;  %p3787_p4 = scmp.ne.s32.totalorder (!%p3786_p10), %s3766_s23, 0 }
  0xe5   : > { %482 = sbr.rel (%p3786_p10) target bundleno = 1326 (0x52e), region = 60  ;;  %s1860_s8 = sshll.u32 (!%p3786_p10), %s484_s15, 6 }
  0xe6   : > { %s485_s16 = scalar_lea.sflag (!%p3786_p10), [#allocation5], %s484_s15  ;;  %s3422_s4 = scalar_lea.vmem (!%p3786_p10), [#allocation4], %s1860_s8 }
  0xec   : > { %2866 = dma.done.wait (%p3787_p4), %s485_s16, 1024  }
  0xed   : > { %2868 = vsyncadd (%p3787_p4), %s485_s16, 4294966272  ;;  %s3788_s10 = sld [smem:[#allocation24_spill]]  ;;  %s3789_s9 = sld [smem:[#allocation32_spill]] }
  0xee   : > { %s493_s13 = sand.u32 1, %s3091_s28  }
  0xef   : > { %s494_s2 = scalar_lea.sflag [#allocation8], %s493_s13 }
  0xf3   : > { %s495_s6 = sand.u32 1, %s3788_s10   ;;  %p3790_p8 = scmp.ne.s32.totalorder %s3789_s9, 0 }
  0xf4   : > { %s1861_s5 = sshll.u32 %s495_s6, 6 }
  0xf5   : > { %s3430_s11 = scalar_lea.vmem [#allocation7], %s1861_s5 }
  0xf6   : > { %2870 = dma.done.wait (%p3790_p8), %s494_s2, 2048  }
  0xf7   : > { %2872 = vsyncadd (%p3790_p8), %s494_s2, 4294965248  ;;  %s3791_s19 = sld [smem:[#allocation23_spill]]  ;;  %s3437_s23 = scalar_lea.vmem [#allocation9], %s1861_s5 }
  0xf8   : > { %s512_s14 = scalar_lea.sflag [#allocation11], %s493_s13 }
  0xfd   : > { %s513_s29 = sand.u32 1, %s3791_s19  }
  0xfe   : > { %s1863_s24 = sshll.u32 %s513_s29, 7 }
  0xff   : > { %s3439_s0 = scalar_lea.vmem [#allocation10], %s1863_s24 }
 0x100   : > { %2874 = dma.done.wait (%p3369_p1), %s512_s14, 2048  }
 0x101   : > { %2876 = vsyncadd (%p3369_p1), %s512_s14, 4294965248  ;;  %p3792_p5 = scmp.eq.s32.totalorder %s3091_s28, 0 }
 0x103   : > { %2878 = dma.done.wait (%p3792_p5), [#allocation11], 2048   ;;  %p3793_p9 = pmov %p3792_p5 }
 0x104   : > { %p3794_p12 = pmov %p3792_p5 }
 0x105   : > { %2880 = vsyncadd (%p3793_p9), [#allocation11], 4294965248 }
 0x106   : > { %2882 = dma.done.wait (%p3794_p12), [#allocation14], 2048   ;;  %p3795_p0 = pmov %p3792_p5 }
 0x107   : > { %s3796_s18 = sld [smem:[#allocation27_spill]]  ;;  %s3797_s15 = sld [smem:[#allocation26_spill]] }
 0x108   : > { %2884 = vsyncadd (%p3795_p0), [#allocation14], 4294965248  ;;  %s3798_s10 = sld [smem:[#allocation39_spill]] }
 0x10d   : > { %p586_p6 = scmp.lt.s32.totalorder %s3796_s18, 2  ;;  %p593_p7 = scmp.eq.s32.totalorder %s3796_s18, 0 }
 0x10e   : > { %p594_p13 = scmp.eq.s32.totalorder %s3797_s15, 0 }
 0x10f   : > { %s3827_s18 = smov (!%p586_p6, %s3796_s18), 2 }
 0x110   : > { %p595_p1 = pnand %p594_p13, %p593_p7  ;;  %s1866_s20 = sshll.u32 %s3827_s18, 3 }
 0x111   : > { %s3460_s9 = scalar_lea.vmem %s3798_s10, %s1866_s20  ;;  %v2956_v0 = vmov (!%p595_p1), 0.0  }
 0x112   : > { %598 = sbr.rel (%p595_p1) target bundleno = 281 (0x119), region = 88  ;;  %599 = vst [vmem:[#allocation15] sm:$0xff] (!%p595_p1), %v2956_v0 }
 0x119 PF: > { %s3799_s13 = sld [smem:[#allocation26_spill]] }
 0x11f   : > { %p1867_p11 = scmp.ne.s32.totalorder %s3799_s13, 0 }
 0x120   : > { %v2957_v1 = vmov (!%p1867_p11), 0.0  }
 0x121   : > { %602 = sbr.rel (%p1867_p11) target bundleno = 297 (0x129), region = 92  ;;  %603 = vst [vmem:[#allocation2] sm:$0xff] (!%p1867_p11), %v2957_v1  ;;  %604 = vst [vmem:[#allocation2 + $0x8] sm:$0xff] (!%p1867_p11), %v2957_v1 }
 0x122   : > { %605 = vst [vmem:[#allocation2 + $0x10] sm:$0xff] (!%p1867_p11), %v2957_v1  ;;  %606 = vst [vmem:[#allocation2 + $0x18] sm:$0xff] (!%p1867_p11), %v2957_v1 }
 0x123   : > { %607 = vst [vmem:[#allocation2 + $0x20] sm:$0xff] (!%p1867_p11), %v2957_v1  ;;  %608 = vst [vmem:[#allocation2 + $0x28] sm:$0xff] (!%p1867_p11), %v2957_v1 }
 0x124   : > { %609 = vst [vmem:[#allocation2 + $0x30] sm:$0xff] (!%p1867_p11), %v2957_v1  ;;  %610 = vst [vmem:[#allocation2 + $0x38] sm:$0xff] (!%p1867_p11), %v2957_v1 }
 0x125   : > { %611 = vst [vmem:[#allocation2 + $0x40] sm:$0xff] (!%p1867_p11), %v2957_v1  ;;  %612 = vst [vmem:[#allocation2 + $0x48] sm:$0xff] (!%p1867_p11), %v2957_v1 }
 0x126   : > { %613 = vst [vmem:[#allocation2 + $0x50] sm:$0xff] (!%p1867_p11), %v2957_v1  ;;  %614 = vst [vmem:[#allocation2 + $0x58] sm:$0xff] (!%p1867_p11), %v2957_v1 }
 0x127   : > { %615 = vst [vmem:[#allocation2 + $0x60] sm:$0xff] (!%p1867_p11), %v2957_v1  ;;  %616 = vst [vmem:[#allocation2 + $0x68] sm:$0xff] (!%p1867_p11), %v2957_v1 }
 0x128   : > { %617 = vst [vmem:[#allocation2 + $0x70] sm:$0xff] %v2957_v1  ;;  %618 = vst [vmem:[#allocation2 + $0x78] sm:$0xff] %v2957_v1 }
 0x129 PF: > { %v2519_v2 = vld [vmem:[%s3437_s23] sm:$0xff]   ;;  %v2521_v4 = vld [vmem:[%s3437_s23 + $0x8] sm:$0xff]   ;;  %v2523_v6 = vld [vmem:[%s3437_s23 + $0x10] sm:$0xff]  }
 0x12a   : > { %v2520_v3 = vld [vmem:[%s3430_s11] sm:$0xff]   ;;  %2031 = vmatprep.subr.bf16.mxu1 %v2519_v2  ;;  %v2522_v5 = vld [vmem:[%s3430_s11 + $0x8] sm:$0xff]   ;;  %v2524_v7 = vld [vmem:[%s3430_s11 + $0x10] sm:$0xff]  }
 0x12b   : > { %2063 = vmatprep.subr.bf16.mxu0 %v2520_v3  ;;  %2032 = vmatpush3.bf16.msra.mxu1 %v2519_v2  ;;  %v2525_v8 = vld [vmem:[%s3437_s23 + $0x18] sm:$0xff]   ;;  %v2527_v10 = vld [vmem:[%s3437_s23 + $0x20] sm:$0xff]   ;;  %v2529_v12 = vld [vmem:[%s3437_s23 + $0x28] sm:$0xff]  }
 0x12c   : > { %2064 = vmatpush3.bf16.msra.mxu0 %v2520_v3  ;;  %2033 = vmatprep.subr.bf16.mxu1 %v2521_v4  ;;  %v2526_v9 = vld [vmem:[%s3430_s11 + $0x18] sm:$0xff]   ;;  %v2528_v11 = vld [vmem:[%s3430_s11 + $0x20] sm:$0xff]   ;;  %v2530_v14 = vld [vmem:[%s3430_s11 + $0x28] sm:$0xff]  }
 0x12d   : > { %2065 = vmatprep.subr.bf16.mxu0 %v2522_v5  ;;  %v2535_v13 = vld [vmem:[%s3422_s4] sm:$0xff]   ;;  %v2531_v15 = vld [vmem:[%s3437_s23 + $0x30] sm:$0xff]   ;;  %v2533_v17 = vld [vmem:[%s3437_s23 + $0x38] sm:$0xff]  }
 0x12e   : > { %2047 = vmatprep.mubr.bf16.mxu1 %v2535_v13  ;;  %2079 = vmatprep.mubr.bf16.mxu0 %v2535_v13  ;;  %v2532_v16 = vld [vmem:[%s3430_s11 + $0x30] sm:$0xff]   ;;  %v2534_v18 = vld [vmem:[%s3430_s11 + $0x38] sm:$0xff]   ;;  %v2536_v19 = vld [vmem:[%s3422_s4 + $0x8] sm:$0xff]  }
 0x12f   : > { %2034 = vmatpush3.bf16.msra.mxu1 %v2521_v4  ;;  %v2537_v20 = vld [vmem:[%s3422_s4 + $0x10] sm:$0xff]   ;;  %v2538_v21 = vld [vmem:[%s3422_s4 + $0x18] sm:$0xff]   ;;  %v2539_v22 = vld [vmem:[%s3422_s4 + $0x20] sm:$0xff]  }
 0x130   : > { %2066 = vmatpush3.bf16.msra.mxu0 %v2522_v5  ;;  %2035 = vmatprep.subr.bf16.mxu1 %v2523_v6  ;;  %v2540_v23 = vld [vmem:[%s3422_s4 + $0x28] sm:$0xff]   ;;  %v2541_v24 = vld [vmem:[%s3422_s4 + $0x30] sm:$0xff]   ;;  %v2542_v25 = vld [vmem:[%s3422_s4 + $0x38] sm:$0xff]   ;;  %s3800_s4 = sld [smem:[#allocation26_spill]] }
 0x131   : > { %2067 = vmatprep.subr.bf16.mxu0 %v2524_v7  ;;  %v637_v27 = vld [vmem:[#allocation2 + $0x10] sm:$0xff]  ;;  %v635_v31 = vld [vmem:[#allocation2] sm:$0xff]  ;;  %v638_v35 = vld [vmem:[#allocation2 + $0x18] sm:$0xff] }
 0x132   : > { %v636_v40 = vld [vmem:[#allocation2 + $0x8] sm:$0xff]  ;;  %v641_v47 = vld [vmem:[#allocation2 + $0x30] sm:$0xff]  ;;  %v639_v51 = vld [vmem:[#allocation2 + $0x20] sm:$0xff] }
 0x133   : > { %2036 = vmatpush3.bf16.msra.mxu1 %v2523_v6  ;;  %v642_v55 = vld [vmem:[#allocation2 + $0x38] sm:$0xff]  ;;  %v640_v60 = vld [vmem:[#allocation2 + $0x28] sm:$0xff]  ;;  %v645_v3 = vld [vmem:[#allocation2 + $0x50] sm:$0xff] }
 0x134   : > { %2068 = vmatpush3.bf16.msra.mxu0 %v2524_v7  ;;  %2037 = vmatprep.subr.bf16.mxu1 %v2525_v8  ;;  %v643_v7 = vld [vmem:[#allocation2 + $0x40] sm:$0xff] }
 0x135   : > { %2069 = vmatprep.subr.bf16.mxu0 %v2526_v9 }
 0x136   : > { %p1892_p3 = scmp.ne.s32.totalorder %s3800_s4, 2 }
 0x137   : > { %2038 = vmatpush3.bf16.msra.mxu1 %v2525_v8  ;;  %s1057_s6 = sld [smem:[#allocation3]] (!%p1892_p3)  ;;  %s3801_s19 = sld [smem:[#allocation37_spill]] (!%p1892_p3)  ;;  %vm2959_vm0 = vmmov (!%p1892_p3), 0  }
 0x138   : > { %2070 = vmatpush3.bf16.msra.mxu0 %v2526_v9  ;;  %2039 = vmatprep.subr.bf16.mxu1 %v2527_v10  ;;  %s3802_s23 = sld [smem:[#allocation38_spill]] (!%p1892_p3) }
 0x139   : > { %2071 = vmatprep.subr.bf16.mxu0 %v2528_v11 }
 0x13b   : > { %2040 = vmatpush3.bf16.msra.mxu1 %v2527_v10 }
 0x13c   : > { %2072 = vmatpush3.bf16.msra.mxu0 %v2528_v11  ;;  %2041 = vmatprep.subr.bf16.mxu1 %v2529_v12  ;;  %v646_v11 = vld [vmem:[#allocation2 + $0x58] sm:$0xff] }
 0x13d   : > { %2073 = vmatprep.subr.bf16.mxu0 %v2530_v14  ;;  %s1058_s5 = sadd.f32 (!%p1892_p3), 1.0, %s1057_s6 }
 0x13f   : > { %2042 = vmatpush3.bf16.msra.mxu1 %v2529_v12 }
 0x140   : > { %2074 = vmatpush3.bf16.msra.mxu0 %v2530_v14  ;;  %2043 = vmatprep.subr.bf16.mxu1 %v2531_v15 }
 0x141   : > { %2075 = vmatprep.subr.bf16.mxu0 %v2532_v16 }
 0x143   : > { %2044 = vmatpush3.bf16.msra.mxu1 %v2531_v15 }
 0x144   : > { %2076 = vmatpush3.bf16.msra.mxu0 %v2532_v16  ;;  %2045 = vmatprep.subr.bf16.mxu1 %v2533_v17  ;;  %v644_v16 = vld [vmem:[#allocation2 + $0x48] sm:$0xff] }
 0x145   : > { %2077 = vmatprep.subr.bf16.mxu0 %v2534_v18 }
 0x147   : > { %2046 = vmatpush3.bf16.msra.mxu1 %v2533_v17 }
 0x148   : > { %2078 = vmatpush3.bf16.msra.mxu0 %v2534_v18 }
 0x14a   : > { %2048 = vmatmul.mubr.bf16.vlgmr.msra.gmra.mrb[0].mxu1 %v2536_v19 }
 0x14b   : > { %2080 = vmatmul.mubr.bf16.vlgmr.msra.gmra.mrb[0].mxu0 %v2536_v19  ;;  %2051 = vmatprep.mubr.bf16.mxu1 %v2537_v20 }
 0x14c   : > { %2083 = vmatprep.mubr.bf16.mxu0 %v2537_v20 }
 0x152   : > { %2052 = vmatmul.mubr.bf16.gmra.mrb[4].mxu1 %v2538_v21 }
 0x153   : > { %2084 = vmatmul.mubr.bf16.gmra.mrb[4].mxu0 %v2538_v21  ;;  %2055 = vmatprep.mubr.bf16.mxu1 %v2539_v22 }
 0x154   : > { %2087 = vmatprep.mubr.bf16.mxu0 %v2539_v22 }
 0x15a   : > { %2056 = vmatmul.mubr.bf16.gmra.mrb[8].mxu1 %v2540_v23 }
 0x15b   : > { %2088 = vmatmul.mubr.bf16.gmra.mrb[8].mxu0 %v2540_v23  ;;  %2059 = vmatprep.mubr.bf16.mxu1 %v2541_v24  ;;  %v649_v23 = vld [vmem:[#allocation2 + $0x70] sm:$0xff] }
 0x15c   : > { %2091 = vmatprep.mubr.bf16.mxu0 %v2541_v24 }
 0x162   : > { %2060 = vmatmul.mubr.bf16.gmra.mrb[12].mxu1 %v2542_v25 }
 0x163   : > { %2092 = vmatmul.mubr.bf16.gmra.mrb[12].mxu0 %v2542_v25 }
 0x21d   : > { %v2049_v26 = vpop.f32.mrb[0].mxu1 }
 0x21e   : > { %v2081_v28 = vpop.f32.mrb[0].mxu0  ;;  %v813_v29 = vpop.f32.mrb[1].mxu1 }
 0x21f   : > { %v967_v30 = vadd.f32 %v2081_v28, %v2049_v26  ;;  %v958_v32 = vpop.f32.mrb[1].mxu0  ;;  %v2050_v33 = vpop.f32.mrb[2].mxu1 }
 0x220   : > { %v959_v34 = vadd.f32 %v958_v32, %v813_v29  ;;  %v2082_v36 = vpop.f32.mrb[2].mxu0  ;;  %v816_v37 = vpop.f32.mrb[3].mxu1 }
 0x221   : > { %v1023_v38 = vadd.f32 %v967_v30, %v637_v27  ;;  %v970_v39 = vadd.f32 %v2082_v36, %v2050_v33  ;;  %v961_v41 = vpop.f32.mrb[3].mxu0  ;;  %v647_v27 = vld [vmem:[#allocation2 + $0x60] sm:$0xff]  ;;  %v648_v36 = vld [vmem:[#allocation2 + $0x68] sm:$0xff] }
 0x222   : > { %v1021_v42 = vadd.f32 %v959_v34, %v635_v31  ;;  %v962_v43 = vadd.f32 %v961_v41, %v816_v37  ;;  %v650_v31 = vld [vmem:[#allocation2 + $0x78] sm:$0xff] }
 0x223   : > { %1039 = vst [vmem:[#allocation2 + $0x10] sm:$0xff] %v1023_v38  ;;  %v1024_v44 = vadd.f32 %v970_v39, %v638_v35 }
 0x224   : > { %1037 = vst [vmem:[#allocation2] sm:$0xff] %v1021_v42  ;;  %v1022_v45 = vadd.f32 %v962_v43, %v636_v40  ;;  %v1124_v42 = vld [vmem:[#allocation12] sm:$0xff] (!%p1892_p3)  ;;  %v1125_v43 = vld [vmem:[#allocation12 + $0x8] sm:$0xff] (!%p1892_p3) }
 0x225   : > { %1040 = vst [vmem:[#allocation2 + $0x18] sm:$0xff] %v1024_v44  ;;  %v2053_v46 = vpop.f32.mrb[4].mxu1  ;;  %v1126_v44 = vld [vmem:[#allocation12 + $0x10] sm:$0xff] (!%p1892_p3) }
 0x226   : > { %1038 = vst [vmem:[#allocation2 + $0x8] sm:$0xff] %v1022_v45  ;;  %v2085_v48 = vpop.f32.mrb[4].mxu0  ;;  %v829_v49 = vpop.f32.mrb[5].mxu1  ;;  %v2242_v45 = vpack.c.bf16 (!%p1892_p3), %v1125_v43, %v1124_v42  ;;  %v1321_v42 = vld [vmem:[#allocation13 + $0x68] sm:$0xff] (!%p1892_p3) }
 0x227   : > { %v983_v50 = vadd.f32 %v2085_v48, %v2053_v46  ;;  %v974_v52 = vpop.f32.mrb[5].mxu0  ;;  %v2054_v53 = vpop.f32.mrb[6].mxu1  ;;  %v1127_v46 = vld [vmem:[#allocation12 + $0x18] sm:$0xff] (!%p1892_p3)  ;;  %v1128_v48 = vld [vmem:[#allocation12 + $0x20] sm:$0xff] (!%p1892_p3) }
 0x228   : > { %v975_v54 = vadd.f32 %v974_v52, %v829_v49  ;;  %v2086_v56 = vpop.f32.mrb[6].mxu0  ;;  %v832_v57 = vpop.f32.mrb[7].mxu1  ;;  %v1129_v49 = vld [vmem:[#allocation12 + $0x28] sm:$0xff] (!%p1892_p3)  ;;  %2243 = vmatprep.subr.bf16.mxu0 (!%p1892_p3), %v2242_v45  ;;  %v1131_v52 = vld [vmem:[#allocation12 + $0x38] sm:$0xff] (!%p1892_p3) }
 0x229   : > { %v1027_v58 = vadd.f32 %v983_v50, %v641_v47  ;;  %v986_v59 = vadd.f32 %v2086_v56, %v2054_v53  ;;  %v977_v61 = vpop.f32.mrb[7].mxu0  ;;  %v2246_v47 = vpack.c.bf16 (!%p1892_p3), %v1127_v46, %v1126_v44  ;;  %2245 = vmatpush3.bf16.msra.mxu0 (!%p1892_p3), %v2242_v45  ;;  %v2250_v50 = vpack.c.bf16 (!%p1892_p3), %v1129_v49, %v1128_v48  ;;  %v1059_v53 = vld [vmem:[%s3439_s0] sm:$0xff] (!%p1892_p3)  ;;  %v1066_v48 = vld [vmem:[%s3439_s0 + $0x38] sm:$0xff] (!%p1892_p3) }
 0x22a   : > { %v1025_v62 = vadd.f32 %v975_v54, %v639_v51  ;;  %v978_v63 = vadd.f32 %v977_v61, %v832_v57  ;;  %v1130_v51 = vld [vmem:[#allocation12 + $0x30] sm:$0xff] (!%p1892_p3)  ;;  %v3489_v54 = vstv (!%p1892_p3), %s1058_s5 }
 0x22b   : > { %1043 = vst [vmem:[#allocation2 + $0x30] sm:$0xff] %v1027_v58  ;;  %v1028_v0 = vadd.f32 %v986_v59, %v642_v55  ;;  %2247 = vmatprep.subr.bf16.mxu0 (!%p1892_p3), %v2246_v47  ;;  %v1092_v55 = vld [vmem:[#allocation2] sm:$0xff] (!%p1892_p3)  ;;  %v2254_v56 = vpack.c.bf16 (!%p1892_p3), %v1131_v52, %v1130_v51  ;;  %v1076_v57 = vmul.f32 (!%p1892_p3), %v3489_v54, %v1059_v53  ;;  %v1133_v59 = vld [vmem:[#allocation12 + $0x48] sm:$0xff] (!%p1892_p3) }
 0x22c   : > { %1041 = vst [vmem:[#allocation2 + $0x20] sm:$0xff] %v1025_v62  ;;  %v1026_v1 = vadd.f32 %v978_v63, %v640_v60  ;;  %v1132_v58 = vld [vmem:[#allocation12 + $0x40] sm:$0xff] (!%p1892_p3)  ;;  %v1134_v62 = vld [vmem:[#allocation12 + $0x50] sm:$0xff] (!%p1892_p3)  ;;  %v1135_v63 = vld [vmem:[#allocation12 + $0x58] sm:$0xff] (!%p1892_p3)  ;;  %v1083_v53 = vmul.f32 (!%p1892_p3), %v3489_v54, %v1066_v48 }
 0x22d   : > { %1044 = vst [vmem:[#allocation2 + $0x38] sm:$0xff] %v1028_v0  ;;  %v2057_v2 = vpop.f32.mrb[8].mxu1  ;;  %2249 = vmatpush3.bf16.msra.mxu0 (!%p1892_p3), %v2246_v47  ;;  %v1108_v60 = vadd.f32 (!%p1892_p3), %v1092_v55, %v1076_v57  ;;  %v2258_v61 = vpack.c.bf16 (!%p1892_p3), %v1133_v59, %v1132_v58  ;;  %v1308_v0 = vld [vmem:[#allocation13] sm:$0xff] (!%p1892_p3)  ;;  %v1068_v58 = vld [vmem:[%s3439_s0 + $0x48] sm:$0xff] (!%p1892_p3) }
 0x22e   : > { %1042 = vst [vmem:[#allocation2 + $0x28] sm:$0xff] %v1026_v1  ;;  %v2089_v4 = vpop.f32.mrb[8].mxu0  ;;  %v845_v5 = vpop.f32.mrb[9].mxu1  ;;  %2251 = vmatprep.subr.bf16.mxu0 (!%p1892_p3), %v2250_v50  ;;  %v1309_v1 = vld [vmem:[#allocation13 + $0x8] sm:$0xff] (!%p1892_p3) }
 0x22f   : > { %v999_v6 = vadd.f32 %v2089_v4, %v2057_v2  ;;  %v990_v8 = vpop.f32.mrb[9].mxu0  ;;  %v2058_v9 = vpop.f32.mrb[10].mxu1  ;;  %2127 = vmatprep.mubr.f32.mxu0 (!%p1892_p3), %v1108_v60  ;;  %v1310_v2 = vld [vmem:[#allocation13 + $0x10] sm:$0xff] (!%p1892_p3)  ;;  %v1136_v4 = vld [vmem:[#allocation12 + $0x60] sm:$0xff] (!%p1892_p3) }
 0x230   : > { %v991_v10 = vadd.f32 %v990_v8, %v845_v5  ;;  %v2090_v12 = vpop.f32.mrb[10].mxu0  ;;  %v848_v13 = vpop.f32.mrb[11].mxu1  ;;  %v2274_v5 = vpack.c.bf16 (!%p1892_p3), %v1309_v1, %v1308_v0  ;;  %v1069_v60 = vld [vmem:[%s3439_s0 + $0x50] sm:$0xff] (!%p1892_p3) }
 0x231   : > { %v1031_v14 = vadd.f32 %v999_v6, %v645_v3  ;;  %v1002_v15 = vadd.f32 %v2090_v12, %v2058_v9  ;;  %v993_v17 = vpop.f32.mrb[11].mxu0  ;;  %2253 = vmatpush3.bf16.msra.mxu0 (!%p1892_p3), %v2250_v50  ;;  %v2262_v3 = vpack.c.bf16 (!%p1892_p3), %v1135_v63, %v1134_v62  ;;  %v1311_v6 = vld [vmem:[#allocation13 + $0x18] sm:$0xff] (!%p1892_p3)  ;;  %v1312_v9 = vld [vmem:[#allocation13 + $0x20] sm:$0xff] (!%p1892_p3)  ;;  %v1138_v12 = vld [vmem:[#allocation12 + $0x70] sm:$0xff] (!%p1892_p3)  ;;  %v1085_v62 = vmul.f32 (!%p1892_p3), %v3489_v54, %v1068_v58 }
 0x232   : > { %v1029_v18 = vadd.f32 %v991_v10, %v643_v7  ;;  %v994_v19 = vadd.f32 %v993_v17, %v848_v13  ;;  %2255 = vmatprep.subr.bf16.mxu0 (!%p1892_p3), %v2254_v56  ;;  %v1137_v7 = vld [vmem:[#allocation12 + $0x68] sm:$0xff] (!%p1892_p3)  ;;  %v2278_v8 = vpack.c.bf16 (!%p1892_p3), %v1311_v6, %v1310_v2  ;;  %2275 = vmatprep.subr.bf16.mxu1 (!%p1892_p3), %v2274_v5  ;;  %v1098_v49 = vld [vmem:[#allocation2 + $0x30] sm:$0xff] (!%p1892_p3)  ;;  %v1067_v50 = vld [vmem:[%s3439_s0 + $0x40] sm:$0xff] (!%p1892_p3) }
 0x233   : > { %1047 = vst [vmem:[#allocation2 + $0x50] sm:$0xff] %v1031_v14  ;;  %v1032_v20 = vadd.f32 %v1002_v15, %v646_v11  ;;  %v1313_v10 = vld [vmem:[#allocation13 + $0x28] sm:$0xff] (!%p1892_p3)  ;;  %2277 = vmatpush3.bf16.msra.mxu1 (!%p1892_p3), %v2274_v5  ;;  %v2266_v11 = vpack.c.bf16 (!%p1892_p3), %v1137_v7, %v1136_v4  ;;  %v1139_v14 = vld [vmem:[#allocation12 + $0x78] sm:$0xff] (!%p1892_p3)  ;;  %v1314_v15 = vld [vmem:[#allocation13 + $0x30] sm:$0xff] (!%p1892_p3)  ;;  %v1084_v57 = vmul.f32 (!%p1892_p3), %v3489_v54, %v1067_v50 }
 0x234   : > { %1045 = vst [vmem:[#allocation2 + $0x40] sm:$0xff] %v1029_v18  ;;  %v1030_v21 = vadd.f32 %v994_v19, %v644_v16  ;;  %2279 = vmatprep.subr.bf16.mxu1 (!%p1892_p3), %v2278_v8  ;;  %v2282_v13 = vpack.c.bf16 (!%p1892_p3), %v1313_v10, %v1312_v9  ;;  %v1315_v16 = vld [vmem:[#allocation13 + $0x38] sm:$0xff] (!%p1892_p3)  ;;  %v1060_v17 = vld [vmem:[%s3439_s0 + $0x8] sm:$0xff] (!%p1892_p3)  ;;  %v2270_v18 = vpack.c.bf16 (!%p1892_p3), %v1139_v14, %v1138_v12  ;;  %v1061_v19 = vld [vmem:[%s3439_s0 + $0x10] sm:$0xff] (!%p1892_p3) }
 0x235   : > { %1048 = vst [vmem:[#allocation2 + $0x58] sm:$0xff] %v1032_v20  ;;  %v2061_v22 = vpop.f32.mrb[12].mxu1  ;;  %2257 = vmatpush3.bf16.msra.mxu0 (!%p1892_p3), %v2254_v56  ;;  %v2286_v20 = vpack.c.bf16 (!%p1892_p3), %v1315_v16, %v1314_v15  ;;  %v1097_v46 = vld [vmem:[#allocation2 + $0x28] sm:$0xff] (!%p1892_p3)  ;;  %v1099_v56 = vld [vmem:[#allocation2 + $0x38] sm:$0xff] (!%p1892_p3)  ;;  %v1086_v1 = vmul.f32 (!%p1892_p3), %v3489_v54, %v1069_v60  ;;  %v1071_v4 = vld [vmem:[%s3439_s0 + $0x60] sm:$0xff] (!%p1892_p3) }
 0x236   : > { %1046 = vst [vmem:[#allocation2 + $0x48] sm:$0xff] %v1030_v21  ;;  %v2093_v24 = vpop.f32.mrb[12].mxu0  ;;  %v861_v25 = vpop.f32.mrb[13].mxu1  ;;  %2259 = vmatprep.subr.bf16.mxu0 (!%p1892_p3), %v2258_v61  ;;  %v1316_v21 = vld [vmem:[#allocation13 + $0x40] sm:$0xff] (!%p1892_p3)  ;;  %v1070_v2 = vld [vmem:[%s3439_s0 + $0x58] sm:$0xff] (!%p1892_p3)  ;;  %v1088_v9 = vmul.f32 (!%p1892_p3), %v3489_v54, %v1071_v4  ;;  %v1072_v10 = vld [vmem:[%s3439_s0 + $0x68] sm:$0xff] (!%p1892_p3) }
 0x237   : > { %v1015_v26 = vadd.f32 %v2093_v24, %v2061_v22  ;;  %v1006_v28 = vpop.f32.mrb[13].mxu0  ;;  %v2062_v29 = vpop.f32.mrb[14].mxu1  ;;  %2281 = vmatpush3.bf16.msra.mxu1 (!%p1892_p3), %v2278_v8  ;;  %v1317_v22 = vld [vmem:[#allocation13 + $0x48] sm:$0xff] (!%p1892_p3)  ;;  %v1087_v6 = vmul.f32 (!%p1892_p3), %v3489_v54, %v1070_v2  ;;  %v1073_v12 = vld [vmem:[%s3439_s0 + $0x70] sm:$0xff] (!%p1892_p3)  ;;  %v1089_v14 = vmul.f32 (!%p1892_p3), %v3489_v54, %v1072_v10 }
 0x238   : > { %v1007_v30 = vadd.f32 %v1006_v28, %v861_v25  ;;  %v2094_v32 = vpop.f32.mrb[14].mxu0  ;;  %v864_v33 = vpop.f32.mrb[15].mxu1  ;;  %1056 = sbr.rel (%p1892_p3) target bundleno = 1295 (0x50f), region = 96  ;;  %2283 = vmatprep.subr.bf16.mxu1 (!%p1892_p3), %v2282_v13  ;;  %v1093_v24 = vld [vmem:[#allocation2 + $0x8] sm:$0xff] (!%p1892_p3)  ;;  %v1078_v25 = vmul.f32 (!%p1892_p3), %v3489_v54, %v1061_v19  ;;  %v1063_v28 = vld [vmem:[%s3439_s0 + $0x20] sm:$0xff] (!%p1892_p3) }
 0x239   : > { %v1035_v34 = vadd.f32 %v1015_v26, %v649_v23  ;;  %v1018_v35 = vadd.f32 %v2094_v32, %v2062_v29  ;;  %v1009_v37 = vpop.f32.mrb[15].mxu0  ;;  %2261 = vmatpush3.bf16.msra.mxu0 (!%p1892_p3), %v2258_v61  ;;  %v1077_v23 = vmul.f32 (!%p1892_p3), %v3489_v54, %v1060_v17  ;;  %v1062_v26 = vld [vmem:[%s3439_s0 + $0x18] sm:$0xff] (!%p1892_p3)  ;;  %v2290_v29 = vpack.c.bf16 (!%p1892_p3), %v1317_v22, %v1316_v21 }
 0x23a   : > { %v1033_v38 = vadd.f32 %v1007_v30, %v647_v27  ;;  %v1010_v39 = vadd.f32 %v1009_v37, %v864_v33  ;;  %2263 = vmatprep.subr.bf16.mxu0 (!%p1892_p3), %v2262_v3  ;;  %v1094_v27 = vld [vmem:[#allocation2 + $0x10] sm:$0xff] (!%p1892_p3)  ;;  %v1079_v33 = vmul.f32 (!%p1892_p3), %v3489_v54, %v1062_v26  ;;  %v1064_v37 = vld [vmem:[%s3439_s0 + $0x28] sm:$0xff] (!%p1892_p3)  ;;  %v1115_v61 = vadd.f32 (!%p1892_p3), %v1099_v56, %v1083_v53  ;;  %v1323_v26 = vld [vmem:[#allocation13 + $0x78] sm:$0xff] (!%p1892_p3) }
 0x23b   : > { %1051 = vst [vmem:[#allocation2 + $0x70] sm:$0xff] %v1035_v34  ;;  %v1036_v40 = vadd.f32 %v1018_v35, %v650_v31  ;;  %2285 = vmatpush3.bf16.msra.mxu1 (!%p1892_p3), %v2282_v13  ;;  %v1318_v30 = vld [vmem:[#allocation13 + $0x50] sm:$0xff] (!%p1892_p3)  ;;  %v1319_v31 = vld [vmem:[#allocation13 + $0x58] sm:$0xff] (!%p1892_p3)  ;;  %v1109_v32 = vadd.f32 (!%p1892_p3), %v1093_v24, %v1077_v23  ;;  %v1110_v34 = vadd.f32 (!%p1892_p3), %v1094_v27, %v1078_v25  ;;  %v1100_v59 = vld [vmem:[#allocation2 + $0x40] sm:$0xff] (!%p1892_p3) }
 0x23c   : > { %1049 = vst [vmem:[#allocation2 + $0x60] sm:$0xff] %v1033_v38  ;;  %v1034_v41 = vadd.f32 %v1010_v39, %v648_v36  ;;  %2287 = vmatprep.subr.bf16.mxu1 (!%p1892_p3), %v2286_v20  ;;  %v1095_v35 = vld [vmem:[#allocation2 + $0x18] sm:$0xff] (!%p1892_p3)  ;;  %v1080_v36 = vmul.f32 (!%p1892_p3), %v3489_v54, %v1063_v28  ;;  %v1096_v38 = vld [vmem:[#allocation2 + $0x20] sm:$0xff] (!%p1892_p3)  ;;  %v1065_v39 = vld [vmem:[%s3439_s0 + $0x30] sm:$0xff] (!%p1892_p3)  ;;  %v1081_v44 = vmul.f32 (!%p1892_p3), %v3489_v54, %v1064_v37 }
 0x23d   : > { %1052 = vst [vmem:[#allocation2 + $0x78] sm:$0xff] %v1036_v40  ;;  %2265 = vmatpush3.bf16.msra.mxu0 (!%p1892_p3), %v2262_v3  ;;  %v2294_v40 = vpack.c.bf16 (!%p1892_p3), %v1319_v31, %v1318_v30  ;;  %v1111_v43 = vadd.f32 (!%p1892_p3), %v1095_v35, %v1079_v33  ;;  %v1082_v47 = vmul.f32 (!%p1892_p3), %v3489_v54, %v1065_v39  ;;  %v1101_v0 = vld [vmem:[#allocation2 + $0x48] sm:$0xff] (!%p1892_p3)  ;;  %v1102_v3 = vld [vmem:[#allocation2 + $0x50] sm:$0xff] (!%p1892_p3)  ;;  %v1103_v8 = vld [vmem:[#allocation2 + $0x58] sm:$0xff] (!%p1892_p3) }
 0x23e   : > { %1050 = vst [vmem:[#allocation2 + $0x68] sm:$0xff] %v1034_v41  ;;  %2267 = vmatprep.subr.bf16.mxu0 (!%p1892_p3), %v2266_v11  ;;  %v1320_v41 = vld [vmem:[#allocation13 + $0x60] sm:$0xff] (!%p1892_p3)  ;;  %v1112_v45 = vadd.f32 (!%p1892_p3), %v1096_v38, %v1080_v36  ;;  %v1113_v52 = vadd.f32 (!%p1892_p3), %v1097_v46, %v1081_v44  ;;  %v1116_v63 = vadd.f32 (!%p1892_p3), %v1100_v59, %v1084_v57  ;;  %v1322_v25 = vld [vmem:[#allocation13 + $0x70] sm:$0xff] (!%p1892_p3) }
 0x23f   : > { %2289 = vmatpush3.bf16.msra.mxu1 %v2286_v20  ;;  %v2298_v51 = vpack.c.bf16 %v1321_v42, %v1320_v41  ;;  %v1114_v55 = vadd.f32 %v1098_v49, %v1082_v47  ;;  %v1117_v5 = vadd.f32 %v1101_v0, %v1085_v62  ;;  %v1118_v7 = vadd.f32 %v1102_v3, %v1086_v1  ;;  %v1893_v28 = vld [vmem:[%s3801_s19] ss:$0 sm:$0xff] }
 0x240   : > { %2291 = vmatprep.subr.bf16.mxu1 %v2290_v29  ;;  %v1119_v13 = vadd.f32 %v1103_v8, %v1087_v6  ;;  %v1090_v17 = vmul.f32 %v3489_v54, %v1073_v12  ;;  %v2302_v27 = vpack.c.bf16 %v1323_v26, %v1322_v25 }
 0x241   : > { %2269 = vmatpush3.bf16.msra.mxu0 %v2266_v11 }
 0x242   : > { %2271 = vmatprep.subr.bf16.mxu0 %v2270_v18  ;;  %v1106_v19 = vld [vmem:[#allocation2 + $0x70] sm:$0xff] }
 0x243   : > { %2293 = vmatpush3.bf16.msra.mxu1 %v2290_v29  ;;  %v1104_v11 = vld [vmem:[#allocation2 + $0x60] sm:$0xff]  ;;  %v1122_v22 = vadd.f32 %v1106_v19, %v1090_v17 }
 0x244   : > { %2295 = vmatprep.subr.bf16.mxu1 %v2294_v40  ;;  %v1120_v15 = vadd.f32 %v1104_v11, %v1088_v9  ;;  %v1107_v23 = vld [vmem:[#allocation2 + $0x78] sm:$0xff] }
 0x245   : > { %2273 = vmatpush3.bf16.msra.mxu0 %v2270_v18  ;;  %v1105_v16 = vld [vmem:[#allocation2 + $0x68] sm:$0xff]  ;;  %v1074_v18 = vld [vmem:[%s3439_s0 + $0x78] sm:$0xff] }
 0x246   : > { %v1121_v20 = vadd.f32 %v1105_v16, %v1089_v14  ;;  %v1091_v21 = vmul.f32 %v3489_v54, %v1074_v18  ;;  %v2960_v14 = vmov 0.0  }
 0x247   : > { %2297 = vmatpush3.bf16.msra.mxu1 %v2294_v40 }
 0x248   : > { %2128 = vmatmul.mubr.f32.vlgmr.msra.gmra.mrb[0].mxu0 %v1109_v32  ;;  %2299 = vmatprep.subr.bf16.mxu1 %v2298_v51  ;;  %v1123_v24 = vadd.f32 %v1107_v23, %v1091_v21 }
 0x249   : > { %2130 = vmatprep.mubr.f32.mxu0 %v1110_v34 }
 0x24b   : > { %2301 = vmatpush3.bf16.msra.mxu1 %v2298_v51 }
 0x24c   : > { %2131 = vmatmul.mubr.f32.gmra.mrb[2].mxu0 %v1111_v43  ;;  %2303 = vmatprep.subr.bf16.mxu1 %v2302_v27 }
 0x24d   : > { %2133 = vmatprep.mubr.f32.mxu0 %v1112_v45 }
 0x24f   : > { %2305 = vmatpush3.bf16.msra.mxu1 %v2302_v27 }
 0x250   : > { %2134 = vmatmul.mubr.f32.gmra.mrb[4].mxu0 %v1113_v52 }
 0x251   : > { %2136 = vmatprep.mubr.f32.mxu0 %v1114_v55 }
 0x254   : > { %2137 = vmatmul.mubr.f32.gmra.mrb[6].mxu0 %v1115_v61 }
 0x255   : > { %2139 = vmatprep.mubr.f32.mxu0 %v1116_v63 }
 0x258   : > { %2140 = vmatmul.mubr.f32.gmra.mrb[8].mxu0 %v1117_v5 }
 0x259   : > { %2142 = vmatprep.mubr.f32.mxu0 %v1118_v7 }
 0x25c   : > { %2143 = vmatmul.mubr.f32.gmra.mrb[10].mxu0 %v1119_v13  ;;  %v2958_v13 = vmov 0.0|0.0  }
 0x25d   : > { %2145 = vmatprep.mubr.f32.mxu0 %v1120_v15  ;;  %2306 = vmatprep.subr.bf16.mxu0 %v2958_v13  ;;  %v3529_v15 = vld [vmem:[%s3802_s23] ss:$0 sm:$0xff] }
 0x260   : > { %2146 = vmatmul.mubr.f32.gmra.mrb[12].mxu0 %v1121_v20 }
 0x261   : > { %2148 = vmatprep.mubr.f32.mxu0 %v1122_v22 }
 0x264   : > { %2149 = vmatmul.mubr.f32.gmra.mrb[14].mxu0 %v1123_v24 }
 0x265   : > { %2239 = vmatprep.mubr.msk.f32.mxu0 %vm2959_vm0, %v2960_v14 }
 0x31b   : > { %v2129_v29 = vpop.f32.mrb[0].mxu0 }
 0x31c   : > { %v1219_v30 = vadd.f32 %v2129_v29, %v1893_v28  ;;  %v1213_v31 = vpop.f32.mrb[1].mxu0 }
 0x31d   : > { %v1214_v54 = vadd.f32 %v1893_v28, %v1213_v31 }
 0x31e   : > { %v1293_v34 = vmax.f32 %v1219_v30, 0.0 }
 0x31f   : > { %v2132_v32 = vpop.f32.mrb[2].mxu0  ;;  %v1292_v33 = vmax.f32 %v1214_v54, 0.0 }
 0x320   : > { %v1229_v35 = vadd.f32 %v2132_v32, %v1893_v28  ;;  %v1223_v36 = vpop.f32.mrb[3].mxu0 }
 0x321   : > { %v1224_v37 = vadd.f32 %v1893_v28, %v1223_v36  ;;  %2183 = vmatprep.mubr.f32.mxu1 %v1292_v33 }
 0x322   : > { %2184 = vmatmul.mubr.f32.vlgmr.msra.gmra.mrb[0].mxu1 %v1293_v34  ;;  %v1295_v40 = vmax.f32 %v1229_v35, 0.0 }
 0x323   : > { %v1294_v38 = vmax.f32 %v1224_v37, 0.0  ;;  %v2135_v39 = vpop.f32.mrb[4].mxu0 }
 0x324   : > { %v1239_v41 = vadd.f32 %v2135_v39, %v1893_v28  ;;  %v1233_v42 = vpop.f32.mrb[5].mxu0 }
 0x325   : > { %v1234_v43 = vadd.f32 %v1893_v28, %v1233_v42  ;;  %2186 = vmatprep.mubr.f32.mxu1 %v1294_v38 }
 0x326   : > { %2187 = vmatmul.mubr.f32.gmra.mrb[2].mxu1 %v1295_v40  ;;  %v1297_v46 = vmax.f32 %v1239_v41, 0.0 }
 0x327   : > { %v1296_v44 = vmax.f32 %v1234_v43, 0.0  ;;  %v2138_v45 = vpop.f32.mrb[6].mxu0 }
 0x328   : > { %v1249_v47 = vadd.f32 %v2138_v45, %v1893_v28  ;;  %v1243_v48 = vpop.f32.mrb[7].mxu0 }
 0x329   : > { %v1244_v49 = vadd.f32 %v1893_v28, %v1243_v48  ;;  %2189 = vmatprep.mubr.f32.mxu1 %v1296_v44 }
 0x32a   : > { %2190 = vmatmul.mubr.f32.gmra.mrb[4].mxu1 %v1297_v46  ;;  %v1299_v52 = vmax.f32 %v1249_v47, 0.0 }
 0x32b   : > { %v1298_v50 = vmax.f32 %v1244_v49, 0.0  ;;  %v2141_v51 = vpop.f32.mrb[8].mxu0 }
 0x32c   : > { %v1259_v53 = vadd.f32 %v2141_v51, %v1893_v28  ;;  %v1253_v55 = vpop.f32.mrb[9].mxu0 }
 0x32d   : > { %v1254_v56 = vadd.f32 %v1893_v28, %v1253_v55  ;;  %2192 = vmatprep.mubr.f32.mxu1 %v1298_v50 }
 0x32e   : > { %2193 = vmatmul.mubr.f32.gmra.mrb[6].mxu1 %v1299_v52  ;;  %v1301_v59 = vmax.f32 %v1259_v53, 0.0 }
 0x32f   : > { %v1300_v57 = vmax.f32 %v1254_v56, 0.0  ;;  %v2144_v58 = vpop.f32.mrb[10].mxu0 }
 0x330   : > { %v1269_v60 = vadd.f32 %v2144_v58, %v1893_v28  ;;  %v1263_v61 = vpop.f32.mrb[11].mxu0 }
 0x331   : > { %v1264_v62 = vadd.f32 %v1893_v28, %v1263_v61  ;;  %2195 = vmatprep.mubr.f32.mxu1 %v1300_v57 }
 0x332   : > { %2196 = vmatmul.mubr.f32.gmra.mrb[8].mxu1 %v1301_v59  ;;  %v1303_v1 = vmax.f32 %v1269_v60, 0.0 }
 0x333   : > { %v1302_v63 = vmax.f32 %v1264_v62, 0.0  ;;  %v2147_v0 = vpop.f32.mrb[12].mxu0 }
 0x334   : > { %v1279_v2 = vadd.f32 %v2147_v0, %v1893_v28  ;;  %v1273_v3 = vpop.f32.mrb[13].mxu0 }
 0x335   : > { %v1274_v4 = vadd.f32 %v1893_v28, %v1273_v3  ;;  %2198 = vmatprep.mubr.f32.mxu1 %v1302_v63 }
 0x336   : > { %2199 = vmatmul.mubr.f32.gmra.mrb[10].mxu1 %v1303_v1  ;;  %v1305_v7 = vmax.f32 %v1279_v2, 0.0 }
 0x337   : > { %v1304_v5 = vmax.f32 %v1274_v4, 0.0  ;;  %v2150_v6 = vpop.f32.mrb[14].mxu0 }
 0x338   : > { %v1289_v8 = vadd.f32 %v2150_v6, %v1893_v28  ;;  %v1283_v9 = vpop.f32.mrb[15].mxu0 }
 0x339   : > { %v1284_v10 = vadd.f32 %v1893_v28, %v1283_v9  ;;  %2201 = vmatprep.mubr.f32.mxu1 %v1304_v5 }
 0x33a   : > { %2202 = vmatmul.mubr.f32.gmra.mrb[12].mxu1 %v1305_v7  ;;  %v1307_v12 = vmax.f32 %v1289_v8, 0.0 }
 0x33b   : > { %v1306_v11 = vmax.f32 %v1284_v10, 0.0 }
 0x33d   : > { %2204 = vmatprep.mubr.f32.mxu1 %v1306_v11 }
 0x33e   : > { %2205 = vmatmul.mubr.f32.gmra.mrb[14].mxu1 %v1307_v12 }
 0x3f5   : > { %v2185_v16 = vpop.f32.mrb[0].mxu1 }
 0x3f6   : > { %v3532_v17 = vadd.f32 %v2185_v16, %v3529_v15  ;;  %v1397_v18 = vpop.f32.mrb[1].mxu1 }
 0x3f7   : > { %v3535_v19 = vadd.f32 %v3529_v15, %v1397_v18 }
 0x3f8   : > { %v1896_v20 = vmul.f32 -1.442695, %v3532_v17 }
 0x3f9   : > { %v1895_v21 = vmul.f32 -1.442695, %v3535_v19  ;;  %v2188_v22 = vpop.f32.mrb[2].mxu1 }
 0x3fa   : > { %2543 = vpow2.f32 %v1896_v20  ;;  %v3540_v23 = vadd.f32 %v2188_v22, %v3529_v15  ;;  %v1407_v24 = vpop.f32.mrb[3].mxu1 }
 0x3fb   : > { %2545 = vpow2.f32 %v1895_v21  ;;  %v3543_v25 = vadd.f32 %v3529_v15, %v1407_v24 }
 0x3fc   : > { %v1898_v26 = vmul.f32 -1.442695, %v3540_v23 }
 0x3fd   : > { %v1897_v27 = vmul.f32 -1.442695, %v3543_v25  ;;  %v2191_v28 = vpop.f32.mrb[4].mxu1 }
 0x3fe   : > { %2547 = vpow2.f32 %v1898_v26  ;;  %v3548_v29 = vadd.f32 %v2191_v28, %v3529_v15  ;;  %v1417_v30 = vpop.f32.mrb[5].mxu1 }
 0x3ff   : > { %2549 = vpow2.f32 %v1897_v27  ;;  %v3551_v31 = vadd.f32 %v3529_v15, %v1417_v30 }
 0x400   : > { %v1900_v54 = vmul.f32 -1.442695, %v3548_v29 }
 0x401   : > { %v1899_v32 = vmul.f32 -1.442695, %v3551_v31  ;;  %v2194_v33 = vpop.f32.mrb[6].mxu1 }
 0x402   : > { %2551 = vpow2.f32 %v1900_v54  ;;  %v3556_v34 = vadd.f32 %v2194_v33, %v3529_v15  ;;  %v1427_v35 = vpop.f32.mrb[7].mxu1 }
 0x403   : > { %2553 = vpow2.f32 %v1899_v32  ;;  %v3559_v36 = vadd.f32 %v3529_v15, %v1427_v35 }
 0x404   : > { %v2544_v37 = vpop.eup %2543  ;;  %v1902_v38 = vmul.f32 -1.442695, %v3556_v34 }
 0x405   : > { %v2546_v39 = vpop.eup %2545  ;;  %v1525_v40 = vadd.f32 1.0, %v2544_v37  ;;  %v1901_v41 = vmul.f32 -1.442695, %v3559_v36  ;;  %v2197_v42 = vpop.f32.mrb[8].mxu1 }
 0x406   : > { %v1524_v43 = vadd.f32 1.0, %v2546_v39  ;;  %2555 = vpow2.f32 %v1902_v38  ;;  %v3564_v44 = vadd.f32 %v2197_v42, %v3529_v15  ;;  %v1437_v45 = vpop.f32.mrb[9].mxu1 }
 0x407   : > { %2557 = vrcp.f32 %v1525_v40  ;;  %v3567_v46 = vadd.f32 %v3529_v15, %v1437_v45 }
 0x408   : > { %v2548_v47 = vpop.eup %2547  ;;  %2559 = vrcp.f32 %v1524_v43  ;;  %v1904_v48 = vmul.f32 -1.442695, %v3564_v44 }
 0x409   : > { %v2550_v49 = vpop.eup %2549  ;;  %v1527_v50 = vadd.f32 1.0, %v2548_v47  ;;  %2561 = vpow2.f32 %v1901_v41  ;;  %v1903_v51 = vmul.f32 -1.442695, %v3567_v46  ;;  %v2200_v52 = vpop.f32.mrb[10].mxu1 }
 0x40a   : > { %v1526_v53 = vadd.f32 1.0, %v2550_v49  ;;  %2563 = vpow2.f32 %v1904_v48  ;;  %v3572_v55 = vadd.f32 %v2200_v52, %v3529_v15  ;;  %v1447_v56 = vpop.f32.mrb[11].mxu1 }
 0x40b   : > { %2565 = vrcp.f32 %v1527_v50  ;;  %v3575_v57 = vadd.f32 %v3529_v15, %v1447_v56 }
 0x40c   : > { %v2552_v58 = vpop.eup %2551  ;;  %2567 = vrcp.f32 %v1526_v53  ;;  %v1906_v59 = vmul.f32 -1.442695, %v3572_v55 }
 0x40d   : > { %v2554_v60 = vpop.eup %2553  ;;  %v1529_v61 = vadd.f32 1.0, %v2552_v58  ;;  %2569 = vpow2.f32 %v1903_v51  ;;  %v1905_v62 = vmul.f32 -1.442695, %v3575_v57  ;;  %v2203_v63 = vpop.f32.mrb[12].mxu1 }
 0x40e   : > { %v1528_v0 = vadd.f32 1.0, %v2554_v60  ;;  %2571 = vpow2.f32 %v1906_v59  ;;  %v3580_v1 = vadd.f32 %v2203_v63, %v3529_v15  ;;  %v1457_v2 = vpop.f32.mrb[13].mxu1 }
 0x40f   : > { %2573 = vrcp.f32 %v1529_v61  ;;  %v3583_v3 = vadd.f32 %v3529_v15, %v1457_v2 }
 0x410   : > { %v2556_v4 = vpop.eup %2555  ;;  %2575 = vrcp.f32 %v1528_v0  ;;  %v1908_v5 = vmul.f32 -1.442695, %v3580_v1 }
 0x411   : > { %v2558_v6 = vpop.eup %2557  ;;  %v1531_v7 = vadd.f32 1.0, %v2556_v4  ;;  %2577 = vpow2.f32 %v1905_v62  ;;  %v1907_v8 = vmul.f32 -1.442695, %v3583_v3  ;;  %v2206_v9 = vpop.f32.mrb[14].mxu1 }
 0x412   : > { %v2560_v10 = vpop.eup %2559  ;;  %v1573_v11 = vmul.f32 %v2558_v6, %v3532_v17  ;;  %2579 = vpow2.f32 %v1908_v5  ;;  %v3589_v12 = vadd.f32 %v2206_v9, %v3529_v15  ;;  %v1467_v14 = vpop.f32.mrb[15].mxu1 }
 0x413   : > { %v2562_v16 = vpop.eup %2561  ;;  %v1572_v18 = vmul.f32 %v2560_v10, %v3535_v19  ;;  %2581 = vrcp.f32 %v1531_v7  ;;  %v3593_v20 = vadd.f32 %v3529_v15, %v1467_v14  ;;  %v1588_v10 = vld [vmem:[%s3460_s9] sm:$0xff] }
 0x414   : > { %v2564_v21 = vpop.eup %2563  ;;  %v1530_v22 = vadd.f32 1.0, %v2562_v16  ;;  %2583 = vpow2.f32 %v1907_v8  ;;  %v1910_v24 = vmul.f32 -1.442695, %v3589_v12 }
 0x415   : > { %v2566_v26 = vpop.eup %2565  ;;  %v2307_v27 = vpack.c.bf16 %v1573_v11, %v1572_v18  ;;  %v1533_v17 = vadd.f32 1.0, %v2564_v21  ;;  %v1909_v28 = vmul.f32 -1.442695, %v3593_v20  ;;  %v1659_v11 = vld [vmem:[#allocation15] sm:$0xff] }
 0x416   : > { %v2568_v30 = vpop.eup %2567  ;;  %v1575_v54 = vmul.f32 %v2566_v26, %v3540_v23  ;;  %2585 = vrcp.f32 %v1530_v22 }
 0x417   : > { %v2570_v32 = vpop.eup %2569  ;;  %v1574_v19 = vmul.f32 %v2568_v30, %v3543_v25  ;;  %2587 = vrcp.f32 %v1533_v17  ;;  %2308 = vmatpush3.bf16.msra.mxu0 %v2307_v27 }
 0x418   : > { %v2572_v15 = vpop.eup %2571  ;;  %v1532_v33 = vadd.f32 1.0, %v2570_v32  ;;  %2589 = vpow2.f32 %v1910_v24  ;;  %2309 = vmatprep.subr.bf16.mxu0 %v2958_v13 }
 0x419   : > { %v2574_v35 = vpop.eup %2573  ;;  %v2310_v37 = vpack.c.bf16 %v1575_v54, %v1574_v19  ;;  %v1535_v38 = vadd.f32 1.0, %v2572_v15  ;;  %2591 = vpow2.f32 %v1909_v28 }
 0x41a   : > { %v2576_v39 = vpop.eup %2575  ;;  %v1577_v40 = vmul.f32 %v2574_v35, %v3548_v29  ;;  %2593 = vrcp.f32 %v1532_v33 }
 0x41b   : > { %v2578_v23 = vpop.eup %2577  ;;  %v1576_v41 = vmul.f32 %v2576_v39, %v3551_v31  ;;  %2595 = vrcp.f32 %v1535_v38  ;;  %2311 = vmatpush3.bf16.msra.mxu0 %v2310_v37 }
 0x41c   : > { %v2580_v25 = vpop.eup %2579  ;;  %v1534_v42 = vadd.f32 1.0, %v2578_v23  ;;  %2312 = vmatprep.subr.bf16.mxu0 %v2958_v13 }
 0x41d   : > { %v2582_v43 = vpop.eup %2581  ;;  %v2313_v45 = vpack.c.bf16 %v1577_v40, %v1576_v41  ;;  %v1537_v47 = vadd.f32 1.0, %v2580_v25 }
 0x41e   : > { %v2584_v48 = vpop.eup %2583  ;;  %2597 = vrcp.f32 %v1534_v42  ;;  %v1579_v49 = vmul.f32 %v2582_v43, %v3556_v34 }
 0x41f   : > { %2599 = vrcp.f32 %v1537_v47  ;;  %v1536_v50 = vadd.f32 1.0, %v2584_v48  ;;  %2314 = vmatpush3.bf16.msra.mxu0 %v2313_v45 }
 0x420   : > { %v2586_v29 = vpop.eup %2585  ;;  %2315 = vmatprep.subr.bf16.mxu0 %v2958_v13 }
 0x421   : > { %v2588_v31 = vpop.eup %2587  ;;  %v1578_v51 = vmul.f32 %v2586_v29, %v3559_v36  ;;  %2601 = vrcp.f32 %v1536_v50 }
 0x422   : > { %v2590_v52 = vpop.eup %2589  ;;  %v1581_v58 = vmul.f32 %v2588_v31, %v3564_v44 }
 0x423   : > { %v2592_v53 = vpop.eup %2591  ;;  %v2316_v56 = vpack.c.bf16 %v1579_v49, %v1578_v51  ;;  %v1539_v59 = vadd.f32 1.0, %v2590_v52 }
 0x424   : > { %v2594_v60 = vpop.eup %2593  ;;  %v1538_v61 = vadd.f32 1.0, %v2592_v53 }
 0x425   : > { %v2596_v62 = vpop.eup %2595  ;;  %v1580_v34 = vmul.f32 %v2594_v60, %v3567_v46  ;;  %2603 = vrcp.f32 %v1539_v59  ;;  %2317 = vmatpush3.bf16.msra.mxu0 %v2316_v56 }
 0x426   : > { %2605 = vrcp.f32 %v1538_v61  ;;  %2318 = vmatprep.subr.bf16.mxu0 %v2958_v13  ;;  %v1583_v36 = vmul.f32 %v2596_v62, %v3572_v55 }
 0x427   : > { %v2319_v63 = vpack.c.bf16 %v1581_v58, %v1580_v34 }
 0x428   : > { %v2598_v0 = vpop.eup %2597 }
 0x429   : > { %v2600_v2 = vpop.eup %2599  ;;  %v1582_v4 = vmul.f32 %v2598_v0, %v3575_v57  ;;  %2320 = vmatpush3.bf16.msra.mxu0 %v2319_v63 }
 0x42a   : > { %v1585_v44 = vmul.f32 %v2600_v2, %v3580_v1  ;;  %2321 = vmatprep.subr.bf16.mxu0 %v2958_v13 }
 0x42b   : > { %v2602_v5 = vpop.eup %2601  ;;  %v2322_v46 = vpack.c.bf16 %v1583_v36, %v1582_v4 }
 0x42c   : > { %v1584_v6 = vmul.f32 %v2602_v5, %v3583_v3 }
 0x42d   : > { %2323 = vmatpush3.bf16.msra.mxu0 %v2322_v46 }
 0x42e   : > { %v2325_v7 = vpack.c.bf16 %v1585_v44, %v1584_v6  ;;  %2324 = vmatprep.subr.bf16.mxu0 %v2958_v13 }
 0x42f   : > { %v2604_v8 = vpop.eup %2603 }
 0x430   : > { %v2606_v55 = vpop.eup %2605  ;;  %v1587_v9 = vmul.f32 %v2604_v8, %v3589_v12 }
 0x431   : > { %v1586_v57 = vmul.f32 %v2606_v55, %v3593_v20  ;;  %2326 = vmatpush3.bf16.msra.mxu0 %v2325_v7 }
 0x432   : > { %2327 = vmatprep.subr.bf16.mxu0 %v2958_v13 }
 0x433   : > { %v2328_v1 = vpack.c.bf16 %v1587_v9, %v1586_v57 }
 0x435   : > { %2329 = vmatpush3.bf16.msra.mxu0 %v2328_v1 }
 0x438   : > { %2240 = vmatmul.mubr.f32.vlgmr.msra.gmra.mrb[16].mxu0 %v1588_v10 }
 0x50b   : > { %v1655_v14 = vpop.f32.mrb[16].mxu0 }
 0x50c   : > { %v1660_v3 = vadd.f32 %v1659_v11, %v1655_v14  ;;  %v2241_v16 = vpop.f32.mrb[17].mxu0 }
 0x50e   : > { %1661 = vst [vmem:[#allocation15] sm:$0xff] %v1660_v3 }
 0x50f PF: > { %p2392_p2 = scmp.eq.s32.totalorder %s3091_s28, 8  ;;  %s2961_s14 = smov [#allocation15]  }
 0x510   : > { %s1671_s0 = sshll.u32 %s2961_s14, 4  ;;  %s1672_s0 = int_to_ptr.vmem [resolvable:$true] %s1671_s0 }
 0x511   : > { %s2783_s18 = scalar_lea.vmem %s1672_s0, 128  ;;  %p2790_p5 = scmp.lt.s32.totalorder %s1672_s0, %s1672_s0 }
 0x512   : > { %p2784_p10 = scmp.ne.s32.totalorder %s1672_s0, %s2783_s18  ;;  %p2791_p9 = scmp.lt.s32.totalorder %s2783_s18, %s2783_s18 }
 0x514   : > { %p2785_p4 = pnand %p2784_p10, %p2392_p2  ;;  %p2792_p12 = por %p2791_p9, %p2790_p5 }
 0x516   : > { %p2786_p8 = pneg %p2785_p4 }
 0x518   : > { %p2793_p0 = pnand %p2792_p12, %p2786_p8 }
 0x51a   : > { %2796 = shalt.err (!%p2793_p0)
}
 0x51b   : > { %s3803_s8 = sld [smem:[#allocation40_spill]] }
 0x521   : > { %s2797_s16 = scalar_lea.hbm %s3803_s8, 128 }
 0x522   : > { %p2798_p6 = scmp.ne.s32.totalorder %s3803_s8, %s2797_s16  ;;  %p2803_p1 = scmp.lt.u32.totalorder %s2797_s16, %s3803_s8 }
 0x524   : > { %p2799_p7 = pnand %p2798_p6, %p2392_p2 }
 0x526   : > { %p2800_p13 = pneg %p2799_p7 }
 0x528   : > { %p2805_p11 = pnand %p2803_p1, %p2800_p13 }
 0x52a   : > { %2808 = shalt.err (!%p2805_p11)
}
 0x52b   : > { %2364 = dma.vmem_to_hbm [thread:$0]  (%p2392_p2), %s1672_s0, 128, %s3803_s8, [#allocation6]  }
 0x52c   : > { %2886 = dma.done.wait (%p2392_p2), [#allocation6], 128  }
 0x52d   : > { %2888 = vsyncadd (%p2392_p2), [#allocation6], 4294967168 }
 0x52e PF: > { %s32_s27 = sadd.s32 1, %s2943_s27   ;;  %s3805_s15 = sld [smem:[#allocation23_spill]] }
 0x52f   : > { %p3643_p3 = scmp.ge.s32.totalorder %s32_s27, 11   ;;  %s3806_s18 = sld [smem:[#allocation24_spill]] }
 0x530   : > { %s3807_s19 = sld [smem:[#allocation25_spill]]  ;;  %s3808_s20 = sld [smem:[#allocation31_spill]] }
 0x531   : > { %s3809_s28 = sld [smem:[#allocation29_spill]]  ;;  %s3810_s11 = sld [smem:[#allocation30_spill]] }
 0x532   : > { %s3811_s16 = smov %s2899_s17  ;;  %s3812_s17 = smov %s3357_s12 }
 0x533   : > { %s3813_s0 = smov %s2919_s21  ;;  %s3814_s21 = smov %s2923_s22 }
 0x534   : > { %s3815_s22 = smov %s3262_s30  ;;  %s3816_s23 = smov %s2935_s25 }
 0x535   : > { %s3817_s24 = smov %s2939_s26  ;;  %31 = sbr.rel (!%p3643_p3) target bundleno = 24 (0x18), region = 158 }
 0x537   : > { %s3818_s25 = smov %s3809_s28  ;;  %s3819_s26 = smov %s3810_s11 }
 0x53c   :  { %1684 = vsyncpa [#allocation5], 1 }
 0x53d   :  { %1686 = vsyncpa [#allocation5 + $0x1], 1 }
 0x53e   :  { %1687 = vsyncpa [#allocation8], 1 }
 0x53f   :  { %1689 = vsyncpa [#allocation8 + $0x1], 1 }
 0x540   :  { %1690 = vsyncpa [#allocation11], 1 }
 0x541   :  { %1692 = vsyncpa [#allocation11 + $0x1], 1 }
 0x542   :  { %1693 = vsyncpa [#allocation14], 1 }
 0x543   :  { %1694 = vsyncpa [#allocation6], 1 }
 0x544   :  { %1696 = vsyncpa [#allocation6 + $0x1], 1 }

</bundles_post_ra>
